<compile_context>
chip_gen: v7x
topology: tpu7x:2x2x1
jax: 0.10.0
libtpu: 0.0.40
codegen_flags: <defaults>
</compile_context>

<pallas_src>
import functools

import jax
import jax.numpy as jnp
from jax.experimental import pallas as pl
from jax.experimental.pallas import tpu as pltpu


# ----------------------------------------------------------------------------
# Raw parameter init (PyTorch-like uniform fan-in init, PyTorch layouts:
# conv OIHW, linear stored as (in_dim, out_dim) = torch weight transposed)
# ----------------------------------------------------------------------------

def init_featurenet_params(key, n_actions=6, n_latent_dims=4, n_units=32,
                           num_features=64, input_channels=3):
    ks = jax.random.split(key, 8)

    def lin(k, fan_in, fan_out):
        bound = 1.0 / float(fan_in) ** 0.5
        kw, kb = jax.random.split(k)
        w = jax.random.uniform(kw, (fan_in, fan_out), jnp.float32, -bound, bound)
        b = jax.random.uniform(kb, (fan_out,), jnp.float32, -bound, bound)
        return w, b

    def conv(k, cin, cout):
        bound = 1.0 / float(cin * 9) ** 0.5
        kw, kb = jax.random.split(k)
        w = jax.random.uniform(kw, (cout, cin, 3, 3), jnp.float32, -bound, bound)  # OIHW
        b = jax.random.uniform(kb, (cout,), jnp.float32, -bound, bound)
        return w, b

    return {
        # phi = FlexibleImageEncoder(input_channels=3, output_size=n_latent_dims)
        "conv1": conv(ks[0], input_channels, 32),
        "conv2": conv(ks[1], 32, 64),
        "conv3": conv(ks[2], 64, num_features),
        "fc":    lin(ks[3], num_features, n_latent_dims),
        # inv_model = InvNet(n_hidden_layers=1)
        "inv1":  lin(ks[4], 2 * n_latent_dims, n_units),
        "inv2":  lin(ks[5], n_units, n_actions),
        # discriminator = ContrastiveNet(n_hidden_layers=1)
        "disc1": lin(ks[6], 2 * n_latent_dims, n_units),
        "disc2": lin(ks[7], n_units, 1),
    }


# ----------------------------------------------------------------------------
# One-time parameter packing (done outside the kernel, once):
#   * conv (Cout,Cin,3,3) -> 3 block-banded matrices M[kh] of shape
#     (S_in*Cin, (S_in//2)*Cout).  Width padding is folded into M, so a stride-2
#     k3 p1 conv over ALL output rows of one layer is 3 matmuls on unpadded,
#     lane-dense activation stacks.  Biases tiled to the output-lane layout.
#   * average pool folded into the fc weight (tiled + pre-scaled by 1/(s3*s3)).
#   * inv / contrastive heads fused (side-by-side layer-1, block-diag layer-2).
# ----------------------------------------------------------------------------

def _banded_conv_matrices(w_oihw, s_in):
    """M[kh][col*cin+ci, j*cout+co] = sum_kw [col == 2j+kw-1] * W[co,ci,kh,kw]."""
    cout, cin = int(w_oihw.shape[0]), int(w_oihw.shape[1])
    so = s_in // 2
    col = jnp.arange(s_in)[None, :, None]                 # (1, s_in, 1)
    j = jnp.arange(so)[None, None, :]                     # (1, 1, so)
    kw = jnp.arange(3)[:, None, None]                     # (3, 1, 1)
    ind = (col == 2 * j + kw - 1).astype(jnp.float32)     # (3, s_in, so); width pad folded
    m = jnp.einsum("xcj,oiyx->ycijo", ind, w_oihw.astype(jnp.float32))
    return m.reshape(3, s_in * cin, so * cout)


def pack_params(raw, spatial, matmul_dtype=jnp.bfloat16):
    """Pack raw params into the kernel layout (casts / reshapes hoisted out of the hot path)."""
    packed = {}
    s = spatial
    for name in ("conv1", "conv2", "conv3"):
        w, b = raw[name]
        cout = int(w.shape[0])
        so = s // 2
        m = _banded_conv_matrices(w, s).astype(matmul_dtype)       # (3, s*cin, so*cout)
        bt = jnp.tile(b, (so,)).reshape(1, so * cout).astype(jnp.float32)
        packed[name] = (m, bt)
        s = so

    # Average pool folded into fc: tile over the s3 output columns, pre-scale by 1/(s3*s3).
    wfc, bfc = raw["fc"]
    s3 = s                                                          # spatial // 8
    wfc_tiled = (jnp.tile(wfc, (s3, 1)) / float(s3 * s3)).astype(matmul_dtype)
    packed["fc"] = (wfc_tiled, bfc.reshape(1, -1).astype(jnp.float32))

    # Fused heads.  Layer 1: [Wi1 | Wd1] (both heads use tanh).  Layer 2: block-diag.
    wi1, bi1 = raw["inv1"]
    wd1, bd1 = raw["disc1"]
    packed["heads1"] = (
        jnp.concatenate([wi1, wd1], axis=1).astype(matmul_dtype),
        jnp.concatenate([bi1, bd1], axis=0).reshape(1, -1).astype(jnp.float32))
    wi2, bi2 = raw["inv2"]
    wd2, bd2 = raw["disc2"]
    nu, na = int(wi2.shape[0]), int(wi2.shape[1])
    wh2 = jnp.zeros((2 * nu, na + 1), jnp.float32)
    wh2 = wh2.at[:nu, :na].set(wi2).at[nu:, na:].set(wd2)
    packed["heads2"] = (
        wh2.astype(matmul_dtype),
        jnp.concatenate([bi2, bd2], axis=0).reshape(1, -1).astype(jnp.float32))
    return packed


# ----------------------------------------------------------------------------
# The fused kernel: conv1 -> conv2 -> conv3 -> (pool+fc)+tanh -> fused heads
# ----------------------------------------------------------------------------

def _featurenet_kernel(xe_ref, xo_ref,
                       m1_ref, b1_ref, m2_ref, b2_ref, m3_ref, b3_ref,
                       wfc_ref, bfc_ref, wh1_ref, bh1_ref, wh2_ref, bh2_ref,
                       out_ref,
                       *, n2, n_latent, n_actions):
    f32 = jnp.float32

    def mm(lhs, rhs):
        # Cast the activation to the (bf16) weight dtype right at the MXU inputs;
        # accumulate in f32.  All elementwise math stays f32 (v5e-friendly).
        return jnp.dot(lhs.astype(rhs.dtype), rhs, preferred_element_type=f32)

    def conv_layer(even, odd, m_ref, b_ref):
        """All output rows of one stride-2 3x3 conv layer in 3 row-stacked matmuls.

        even / odd: (so*n2, K) f32 stacks of the layer's unpadded even / odd input
        rows; row-group g pairs with output row g.  Width padding is folded into
        m_ref; the only height padding actually used (top row, kh=0, g=0) is the
        zero row-group concatenated below, so nothing else needs zero-filling.
        """
        k = even.shape[-1]
        odd_up = jnp.concatenate(                       # padded row 2g (zero for g=0)
            [jnp.zeros((n2, k), f32), odd[:-n2, :]], axis=0)
        acc = mm(odd_up, m_ref[0])                      # kh = 0
        acc = acc + mm(even, m_ref[1])                  # kh = 1
        acc = acc + mm(odd, m_ref[2])                   # kh = 2
        return jnp.maximum(acc + b_ref[...], 0.0)       # f32 (so*n2, so*cout)

    def split_even_odd(y):
        """Deinterleave output row-groups into the next layer's even/odd input stacks."""
        so = y.shape[0] // n2
        groups = [y[g * n2:(g + 1) * n2, :] for g in range(so)]
        return (jnp.concatenate(groups[0::2], axis=0),
                jnp.concatenate(groups[1::2], axis=0))

    y1 = conv_layer(xe_ref[...], xo_ref[...], m1_ref, b1_ref)
    e1, o1 = split_even_odd(y1)
    y2 = conv_layer(e1, o1, m2_ref, b2_ref)
    e2, o2 = split_even_odd(y2)
    y3 = conv_layer(e2, o2, m3_ref, b3_ref)             # (so3*n2, s3*c3)

    # -- fused AdaptiveAvgPool2d((1,1)) + flatten + fc: pool folded into wfc -------
    fc_all = mm(y3, wfc_ref[...])                        # (so3*n2, L) f32
    so3 = y3.shape[0] // n2
    z_pre = fc_all[0:n2, :]
    for g in range(1, so3):                              # static, tiny (so3 = spatial/8)
        z_pre = z_pre + fc_all[g * n2:(g + 1) * n2, :]
    z = jnp.tanh(z_pre + bfc_ref[...])                   # (n2, L) f32

    # -- fused heads: cat(z0,z1) once; inv & contrastive nets share 2 matmuls ------
    n = n2 // 2
    ctx = jnp.concatenate([z[:n, :], z[n:, :]], axis=-1)           # (n, 2L)
    h = jnp.tanh(mm(ctx, wh1_ref[...]) + bh1_ref[...])             # (n, 2*n_units)
    head2 = mm(h, wh2_ref[...]) + bh2_ref[...]                     # (n, n_actions + 1)
    a_logits = head2[:, :n_actions]
    fakes = jax.nn.sigmoid(head2[:, n_actions:n_actions + 1])

    # -- one lane-dense packed output: [ z | inv logits | fakes | zero pad ] --------
    out_lanes = out_ref.shape[1]
    heads = jnp.concatenate([a_logits, fakes], axis=-1)            # (n, A+1) f32
    heads = jnp.concatenate(
        [heads, jnp.zeros((n2 - n, n_actions + 1), f32)], axis=0)  # pad rows to n2
    pad = jnp.zeros((n2, out_lanes - n_latent - (n_actions + 1)), f32)
    out_ref[...] = jnp.concatenate([z, heads, pad], axis=-1)


# ----------------------------------------------------------------------------
# Wrapper
# ----------------------------------------------------------------------------

def _cost_estimate(packed, n2, spatial):
    flops = 0
    s = spatial
    for name in ("conv1", "conv2", "conv3"):
        m, _ = packed[name]
        so = s // 2
        flops += 2 * 3 * (so * n2) * int(m.shape[1]) * int(m.shape[2])
        s = so
    wfc, _ = packed["fc"]
    flops += 2 * (s * n2) * int(wfc.shape[0]) * int(wfc.shape[1])
    n = n2 // 2
    for name in ("heads1", "heads2"):
        w, _ = packed[name]
        flops += 2 * n * int(w.shape[0]) * int(w.shape[1])
    transcendentals = (n2 * int(wfc.shape[1])
                       + n * int(packed["heads1"][0].shape[1]) + n)
    cin = int(packed["conv1"][0].shape[1]) // spatial
    bytes_accessed = n2 * cin * spatial * spatial * 4 + n2 * 128 * 4
    for pair in packed.values():
        for arr in pair:
            bytes_accessed += int(arr.size) * int(arr.dtype.itemsize)
    return pl.CostEstimate(flops=int(flops), transcendentals=int(transcendentals),
                           bytes_accessed=int(bytes_accessed))


def featurenet_apply(packed, x0_nchw, x1_nchw):
    """z0, z1, a_logits, fakes — the deterministic forward path used by train_batch()."""
    n, c, h, w = x0_nchw.shape
    assert h == w and h % 8 == 0, "spatial size must be square and divisible by 8"
    n2 = 2 * n
    n_latent = int(packed["fc"][0].shape[1])
    n_actions = int(packed["heads2"][0].shape[1]) - 1
    out_lanes = 128
    assert n_latent + n_actions + 1 <= out_lanes

    # Layout plumbing done ONCE in the wrapper: rows as (row, batch, col*cin+ci),
    # stacked into the layer-1 even / odd row stacks the kernel consumes directly.
    xb = jnp.concatenate([x0_nchw, x1_nchw], axis=0).astype(jnp.float32)   # (2n, c, h, w)
    x_rows = jnp.transpose(xb, (2, 0, 3, 1)).reshape(h, n2, w * c)
    x_even = x_rows[0::2].reshape((h // 2) * n2, w * c)
    x_odd = x_rows[1::2].reshape((h // 2) * n2, w * c)

    kernel = functools.partial(_featurenet_kernel, n2=n2,
                               n_latent=n_latent, n_actions=n_actions)

    out = pl.pallas_call(
        kernel,
        out_shape=jax.ShapeDtypeStruct((n2, out_lanes), jnp.float32),
        compiler_params=pltpu.CompilerParams(vmem_limit_bytes=32 * 1024 * 1024),
        cost_estimate=_cost_estimate(packed, n2, h),
    )(x_even, x_odd,
      packed["conv1"][0], packed["conv1"][1],
      packed["conv2"][0], packed["conv2"][1],
      packed["conv3"][0], packed["conv3"][1],
      packed["fc"][0], packed["fc"][1],
      packed["heads1"][0], packed["heads1"][1],
      packed["heads2"][0], packed["heads2"][1])

    z_all = out[:, :n_latent]
    a_logits = out[:n, n_latent:n_latent + n_actions]
    # torch .squeeze() on (N,1); returning (N,) here (for N==1 torch would give a scalar).
    fakes = out[:n, n_latent + n_actions]
    return z_all[:n], z_all[n:], a_logits, fakes


# ----------------------------------------------------------------------------
# Pure-JAX f32 reference (numerical sanity check)
# ----------------------------------------------------------------------------

def _reference_forward(raw, x0, x1):
    def conv(x, w_oihw, b):
        y = jax.lax.conv_general_dilated(
            x, w_oihw, window_strides=(2, 2), padding=((1, 1), (1, 1)),
            dimension_numbers=("NCHW", "OIHW", "NCHW"))
        return jnp.maximum(y + b[None, :, None, None], 0.0)

    def phi(x):
        h = conv(x, *raw["conv1"])
        h = conv(h, *raw["conv2"])
        h = conv(h, *raw["conv3"])
        pooled = jnp.mean(h, axis=(2, 3))
        return jnp.tanh(pooled @ raw["fc"][0] + raw["fc"][1])

    z0, z1 = phi(x0), phi(x1)
    ctx = jnp.concatenate([z0, z1], axis=-1)
    h = jnp.tanh(ctx @ raw["inv1"][0] + raw["inv1"][1])
    a = h @ raw["inv2"][0] + raw["inv2"][1]
    hd = jnp.tanh(ctx @ raw["disc1"][0] + raw["disc1"][1])
    f = jax.nn.sigmoid(hd @ raw["disc2"][0] + raw["disc2"][1])[:, 0]
    return z0, z1, a, f


# ----------------------------------------------------------------------------
# Main
# ----------------------------------------------------------------------------

if __name__ == "__main__":
    key = jax.random.PRNGKey(0)
    kp, kx0, kx1 = jax.random.split(key, 3)

    n_actions, n_latent_dims = 6, 4
    batch, channels, spatial = 2, 3, 16   # FeatureNet.phi requires 3 input channels

    raw_params = init_featurenet_params(kp, n_actions=n_actions, n_latent_dims=n_latent_dims)
    packed = pack_params(raw_params, spatial=spatial, matmul_dtype=jnp.bfloat16)

    x0 = jax.random.normal(kx0, (batch, channels, spatial, spatial), jnp.float32)  # NCHW
    x1 = jax.random.normal(kx1, (batch, channels, spatial, spatial), jnp.float32)

    apply_fn = jax.jit(featurenet_apply)
    z0, z1, a_logits, fakes = apply_fn(packed, x0, x1)
    jax.block_until_ready((z0, z1, a_logits, fakes))

    assert z0.shape == (batch, n_latent_dims)
    assert z1.shape == (batch, n_latent_dims)
    assert a_logits.shape == (batch, n_actions)
    assert fakes.shape == (batch,)

    # Numerical check against a pure-JAX f32 reference (now an assert per review;
    # kernel matmuls use bf16 MXU inputs with f32 accumulation -> small tolerance).
    rz0, rz1, ra, rf = _reference_forward(raw_params, x0, x1)
    max_err = max(
        float(jnp.max(jnp.abs(z0 - rz0))),
        float(jnp.max(jnp.abs(z1 - rz1))),
        float(jnp.max(jnp.abs(a_logits - ra))),
        float(jnp.max(jnp.abs(fakes - rf))),
    )
    assert max_err < 5e-2, f"max abs diff vs f32 reference = {max_err:.3e}"

    print("KERNEL_OK")
</pallas_src>

<mosaic_0001>
module attributes {stable_mosaic.version = 11 : i64} {
  func.func @_featurenet_kernel(%arg0: memref<32x48xf32, #tpu.memory_space<vmem>>, %arg1: memref<32x48xf32, #tpu.memory_space<vmem>>, %arg2: memref<3x48x256xbf16, #tpu.memory_space<vmem>>, %arg3: memref<1x256xf32, #tpu.memory_space<vmem>>, %arg4: memref<3x256x256xbf16, #tpu.memory_space<vmem>>, %arg5: memref<1x256xf32, #tpu.memory_space<vmem>>, %arg6: memref<3x256x128xbf16, #tpu.memory_space<vmem>>, %arg7: memref<1x128xf32, #tpu.memory_space<vmem>>, %arg8: memref<128x4xbf16, #tpu.memory_space<vmem>>, %arg9: memref<1x4xf32, #tpu.memory_space<vmem>>, %arg10: memref<8x64xbf16, #tpu.memory_space<vmem>>, %arg11: memref<1x64xf32, #tpu.memory_space<vmem>>, %arg12: memref<64x7xbf16, #tpu.memory_space<vmem>>, %arg13: memref<1x7xf32, #tpu.memory_space<vmem>>, %arg14: memref<4x128xf32, #tpu.memory_space<vmem>>) attributes {dimension_semantics = [], scalar_prefetch = 0 : i64, scratch_operands = 0 : i64, tpu.core_type = #tpu.core_type<tc>} {
    %c0 = arith.constant 0 : index
    %c0_0 = arith.constant 0 : index
    %0 = vector.load %arg0[%c0, %c0_0] : memref<32x48xf32, #tpu.memory_space<vmem>>, vector<32x48xf32>
    %c0_1 = arith.constant 0 : index
    %c0_2 = arith.constant 0 : index
    %1 = vector.load %arg1[%c0_1, %c0_2] : memref<32x48xf32, #tpu.memory_space<vmem>>, vector<32x48xf32>
    %cst = arith.constant 0.000000e+00 : f32
    %2 = vector.broadcast %cst : f32 to vector<4x48xf32>
    %3 = vector.extract_strided_slice %1 {offsets = [0, 0], sizes = [28, 48], strides = [1, 1]} : vector<32x48xf32> to vector<28x48xf32>
    %4 = tpu.concatenate %2, %3 in 0 : vector<4x48xf32>, vector<28x48xf32> -> vector<32x48xf32>
    %c0_3 = arith.constant 0 : index
    %c0_4 = arith.constant 0 : index
    %c0_5 = arith.constant 0 : index
    %5 = vector.load %arg2[%c0_3, %c0_4, %c0_5] : memref<3x48x256xbf16, #tpu.memory_space<vmem>>, vector<1x48x256xbf16>
    %6 = vector.shape_cast %5 : vector<1x48x256xbf16> to vector<48x256xbf16>
    %7 = arith.truncf %4 : vector<32x48xf32> to vector<32x48xbf16>
    %cst_6 = arith.constant dense<0.000000e+00> : vector<32x256xf32>
    %8 = tpu.matmul %7, %6, %cst_6 {dimension_numbers = #tpu.dot_dimension_numbers<[1], [0], [0], [1], [0, 0, 1, 1], [], []>} : vector<32x48xbf16>, vector<48x256xbf16>, vector<32x256xf32> -> vector<32x256xf32>
    %c1 = arith.constant 1 : index
    %c0_7 = arith.constant 0 : index
    %c0_8 = arith.constant 0 : index
    %9 = vector.load %arg2[%c1, %c0_7, %c0_8] : memref<3x48x256xbf16, #tpu.memory_space<vmem>>, vector<1x48x256xbf16>
    %10 = vector.shape_cast %9 : vector<1x48x256xbf16> to vector<48x256xbf16>
    %11 = arith.truncf %0 : vector<32x48xf32> to vector<32x48xbf16>
    %cst_9 = arith.constant dense<0.000000e+00> : vector<32x256xf32>
    %12 = tpu.matmul %11, %10, %cst_9 {dimension_numbers = #tpu.dot_dimension_numbers<[1], [0], [0], [1], [0, 0, 1, 1], [], []>} : vector<32x48xbf16>, vector<48x256xbf16>, vector<32x256xf32> -> vector<32x256xf32>
    %13 = arith.addf %8, %12 : vector<32x256xf32>
    %c2 = arith.constant 2 : index
    %c0_10 = arith.constant 0 : index
    %c0_11 = arith.constant 0 : index
    %14 = vector.load %arg2[%c2, %c0_10, %c0_11] : memref<3x48x256xbf16, #tpu.memory_space<vmem>>, vector<1x48x256xbf16>
    %15 = vector.shape_cast %14 : vector<1x48x256xbf16> to vector<48x256xbf16>
    %16 = arith.truncf %1 : vector<32x48xf32> to vector<32x48xbf16>
    %cst_12 = arith.constant dense<0.000000e+00> : vector<32x256xf32>
    %17 = tpu.matmul %16, %15, %cst_12 {dimension_numbers = #tpu.dot_dimension_numbers<[1], [0], [0], [1], [0, 0, 1, 1], [], []>} : vector<32x48xbf16>, vector<48x256xbf16>, vector<32x256xf32> -> vector<32x256xf32>
    %18 = arith.addf %13, %17 : vector<32x256xf32>
    %c0_13 = arith.constant 0 : index
    %c0_14 = arith.constant 0 : index
    %19 = vector.load %arg3[%c0_13, %c0_14] : memref<1x256xf32, #tpu.memory_space<vmem>>, vector<1x256xf32>
    %20 = vector.broadcast %19 : vector<1x256xf32> to vector<32x256xf32>
    %21 = arith.addf %18, %20 : vector<32x256xf32>
    %cst_15 = arith.constant 0.000000e+00 : f32
    %22 = vector.broadcast %cst_15 : f32 to vector<32x256xf32>
    %23 = arith.maximumf %21, %22 : vector<32x256xf32>
    %24 = vector.extract_strided_slice %23 {offsets = [0, 0], sizes = [4, 256], strides = [1, 1]} : vector<32x256xf32> to vector<4x256xf32>
    %25 = vector.extract_strided_slice %23 {offsets = [4, 0], sizes = [4, 256], strides = [1, 1]} : vector<32x256xf32> to vector<4x256xf32>
    %26 = vector.extract_strided_slice %23 {offsets = [8, 0], sizes = [4, 256], strides = [1, 1]} : vector<32x256xf32> to vector<4x256xf32>
    %27 = vector.extract_strided_slice %23 {offsets = [12, 0], sizes = [4, 256], strides = [1, 1]} : vector<32x256xf32> to vector<4x256xf32>
    %28 = vector.extract_strided_slice %23 {offsets = [16, 0], sizes = [4, 256], strides = [1, 1]} : vector<32x256xf32> to vector<4x256xf32>
    %29 = vector.extract_strided_slice %23 {offsets = [20, 0], sizes = [4, 256], strides = [1, 1]} : vector<32x256xf32> to vector<4x256xf32>
    %30 = vector.extract_strided_slice %23 {offsets = [24, 0], sizes = [4, 256], strides = [1, 1]} : vector<32x256xf32> to vector<4x256xf32>
    %31 = vector.extract_strided_slice %23 {offsets = [28, 0], sizes = [4, 256], strides = [1, 1]} : vector<32x256xf32> to vector<4x256xf32>
    %32 = tpu.concatenate %24, %26, %28, %30 in 0 : vector<4x256xf32>, vector<4x256xf32>, vector<4x256xf32>, vector<4x256xf32> -> vector<16x256xf32>
    %33 = tpu.concatenate %25, %27, %29, %31 in 0 : vector<4x256xf32>, vector<4x256xf32>, vector<4x256xf32>, vector<4x256xf32> -> vector<16x256xf32>
    %cst_16 = arith.constant 0.000000e+00 : f32
    %34 = vector.broadcast %cst_16 : f32 to vector<4x256xf32>
    %35 = vector.extract_strided_slice %33 {offsets = [0, 0], sizes = [12, 256], strides = [1, 1]} : vector<16x256xf32> to vector<12x256xf32>
    %36 = tpu.concatenate %34, %35 in 0 : vector<4x256xf32>, vector<12x256xf32> -> vector<16x256xf32>
    %c0_17 = arith.constant 0 : index
    %c0_18 = arith.constant 0 : index
    %c0_19 = arith.constant 0 : index
    %37 = vector.load %arg4[%c0_17, %c0_18, %c0_19] : memref<3x256x256xbf16, #tpu.memory_space<vmem>>, vector<1x256x256xbf16>
    %38 = vector.shape_cast %37 : vector<1x256x256xbf16> to vector<256x256xbf16>
    %39 = arith.truncf %36 : vector<16x256xf32> to vector<16x256xbf16>
    %cst_20 = arith.constant dense<0.000000e+00> : vector<16x256xf32>
    %40 = tpu.matmul %39, %38, %cst_20 {dimension_numbers = #tpu.dot_dimension_numbers<[1], [0], [0], [1], [0, 0, 1, 1], [], []>} : vector<16x256xbf16>, vector<256x256xbf16>, vector<16x256xf32> -> vector<16x256xf32>
    %c1_21 = arith.constant 1 : index
    %c0_22 = arith.constant 0 : index
    %c0_23 = arith.constant 0 : index
    %41 = vector.load %arg4[%c1_21, %c0_22, %c0_23] : memref<3x256x256xbf16, #tpu.memory_space<vmem>>, vector<1x256x256xbf16>
    %42 = vector.shape_cast %41 : vector<1x256x256xbf16> to vector<256x256xbf16>
    %43 = arith.truncf %32 : vector<16x256xf32> to vector<16x256xbf16>
    %cst_24 = arith.constant dense<0.000000e+00> : vector<16x256xf32>
    %44 = tpu.matmul %43, %42, %cst_24 {dimension_numbers = #tpu.dot_dimension_numbers<[1], [0], [0], [1], [0, 0, 1, 1], [], []>} : vector<16x256xbf16>, vector<256x256xbf16>, vector<16x256xf32> -> vector<16x256xf32>
    %45 = arith.addf %40, %44 : vector<16x256xf32>
    %c2_25 = arith.constant 2 : index
    %c0_26 = arith.constant 0 : index
    %c0_27 = arith.constant 0 : index
    %46 = vector.load %arg4[%c2_25, %c0_26, %c0_27] : memref<3x256x256xbf16, #tpu.memory_space<vmem>>, vector<1x256x256xbf16>
    %47 = vector.shape_cast %46 : vector<1x256x256xbf16> to vector<256x256xbf16>
    %48 = arith.truncf %33 : vector<16x256xf32> to vector<16x256xbf16>
    %cst_28 = arith.constant dense<0.000000e+00> : vector<16x256xf32>
    %49 = tpu.matmul %48, %47, %cst_28 {dimension_numbers = #tpu.dot_dimension_numbers<[1], [0], [0], [1], [0, 0, 1, 1], [], []>} : vector<16x256xbf16>, vector<256x256xbf16>, vector<16x256xf32> -> vector<16x256xf32>
    %50 = arith.addf %45, %49 : vector<16x256xf32>
    %c0_29 = arith.constant 0 : index
    %c0_30 = arith.constant 0 : index
    %51 = vector.load %arg5[%c0_29, %c0_30] : memref<1x256xf32, #tpu.memory_space<vmem>>, vector<1x256xf32>
    %52 = vector.broadcast %51 : vector<1x256xf32> to vector<16x256xf32>
    %53 = arith.addf %50, %52 : vector<16x256xf32>
    %cst_31 = arith.constant 0.000000e+00 : f32
    %54 = vector.broadcast %cst_31 : f32 to vector<16x256xf32>
    %55 = arith.maximumf %53, %54 : vector<16x256xf32>
    %56 = vector.extract_strided_slice %55 {offsets = [0, 0], sizes = [4, 256], strides = [1, 1]} : vector<16x256xf32> to vector<4x256xf32>
    %57 = vector.extract_strided_slice %55 {offsets = [4, 0], sizes = [4, 256], strides = [1, 1]} : vector<16x256xf32> to vector<4x256xf32>
    %58 = vector.extract_strided_slice %55 {offsets = [8, 0], sizes = [4, 256], strides = [1, 1]} : vector<16x256xf32> to vector<4x256xf32>
    %59 = vector.extract_strided_slice %55 {offsets = [12, 0], sizes = [4, 256], strides = [1, 1]} : vector<16x256xf32> to vector<4x256xf32>
    %60 = tpu.concatenate %56, %58 in 0 : vector<4x256xf32>, vector<4x256xf32> -> vector<8x256xf32>
    %61 = tpu.concatenate %57, %59 in 0 : vector<4x256xf32>, vector<4x256xf32> -> vector<8x256xf32>
    %cst_32 = arith.constant 0.000000e+00 : f32
    %62 = vector.broadcast %cst_32 : f32 to vector<4x256xf32>
    %63 = vector.extract_strided_slice %61 {offsets = [0, 0], sizes = [4, 256], strides = [1, 1]} : vector<8x256xf32> to vector<4x256xf32>
    %64 = tpu.concatenate %62, %63 in 0 : vector<4x256xf32>, vector<4x256xf32> -> vector<8x256xf32>
    %c0_33 = arith.constant 0 : index
    %c0_34 = arith.constant 0 : index
    %c0_35 = arith.constant 0 : index
    %65 = vector.load %arg6[%c0_33, %c0_34, %c0_35] : memref<3x256x128xbf16, #tpu.memory_space<vmem>>, vector<1x256x128xbf16>
    %66 = vector.shape_cast %65 : vector<1x256x128xbf16> to vector<256x128xbf16>
    %67 = arith.truncf %64 : vector<8x256xf32> to vector<8x256xbf16>
    %cst_36 = arith.constant dense<0.000000e+00> : vector<8x128xf32>
    %68 = tpu.matmul %67, %66, %cst_36 {dimension_numbers = #tpu.dot_dimension_numbers<[1], [0], [0], [1], [0, 0, 1, 1], [], []>} : vector<8x256xbf16>, vector<256x128xbf16>, vector<8x128xf32> -> vector<8x128xf32>
    %c1_37 = arith.constant 1 : index
    %c0_38 = arith.constant 0 : index
    %c0_39 = arith.constant 0 : index
    %69 = vector.load %arg6[%c1_37, %c0_38, %c0_39] : memref<3x256x128xbf16, #tpu.memory_space<vmem>>, vector<1x256x128xbf16>
    %70 = vector.shape_cast %69 : vector<1x256x128xbf16> to vector<256x128xbf16>
    %71 = arith.truncf %60 : vector<8x256xf32> to vector<8x256xbf16>
    %cst_40 = arith.constant dense<0.000000e+00> : vector<8x128xf32>
    %72 = tpu.matmul %71, %70, %cst_40 {dimension_numbers = #tpu.dot_dimension_numbers<[1], [0], [0], [1], [0, 0, 1, 1], [], []>} : vector<8x256xbf16>, vector<256x128xbf16>, vector<8x128xf32> -> vector<8x128xf32>
    %73 = arith.addf %68, %72 : vector<8x128xf32>
    %c2_41 = arith.constant 2 : index
    %c0_42 = arith.constant 0 : index
    %c0_43 = arith.constant 0 : index
    %74 = vector.load %arg6[%c2_41, %c0_42, %c0_43] : memref<3x256x128xbf16, #tpu.memory_space<vmem>>, vector<1x256x128xbf16>
    %75 = vector.shape_cast %74 : vector<1x256x128xbf16> to vector<256x128xbf16>
    %76 = arith.truncf %61 : vector<8x256xf32> to vector<8x256xbf16>
    %cst_44 = arith.constant dense<0.000000e+00> : vector<8x128xf32>
    %77 = tpu.matmul %76, %75, %cst_44 {dimension_numbers = #tpu.dot_dimension_numbers<[1], [0], [0], [1], [0, 0, 1, 1], [], []>} : vector<8x256xbf16>, vector<256x128xbf16>, vector<8x128xf32> -> vector<8x128xf32>
    %78 = arith.addf %73, %77 : vector<8x128xf32>
    %c0_45 = arith.constant 0 : index
    %c0_46 = arith.constant 0 : index
    %79 = vector.load %arg7[%c0_45, %c0_46] : memref<1x128xf32, #tpu.memory_space<vmem>>, vector<1x128xf32>
    %80 = vector.broadcast %79 : vector<1x128xf32> to vector<8x128xf32>
    %81 = arith.addf %78, %80 : vector<8x128xf32>
    %cst_47 = arith.constant 0.000000e+00 : f32
    %82 = vector.broadcast %cst_47 : f32 to vector<8x128xf32>
    %83 = arith.maximumf %81, %82 : vector<8x128xf32>
    %c0_48 = arith.constant 0 : index
    %c0_49 = arith.constant 0 : index
    %84 = vector.load %arg8[%c0_48, %c0_49] : memref<128x4xbf16, #tpu.memory_space<vmem>>, vector<128x4xbf16>
    %85 = arith.truncf %83 : vector<8x128xf32> to vector<8x128xbf16>
    %cst_50 = arith.constant dense<0.000000e+00> : vector<8x4xf32>
    %86 = tpu.matmul %85, %84, %cst_50 {dimension_numbers = #tpu.dot_dimension_numbers<[1], [0], [0], [1], [0, 0, 1, 1], [], []>} : vector<8x128xbf16>, vector<128x4xbf16>, vector<8x4xf32> -> vector<8x4xf32>
    %87 = vector.extract_strided_slice %86 {offsets = [0, 0], sizes = [4, 4], strides = [1, 1]} : vector<8x4xf32> to vector<4x4xf32>
    %88 = vector.extract_strided_slice %86 {offsets = [4, 0], sizes = [4, 4], strides = [1, 1]} : vector<8x4xf32> to vector<4x4xf32>
    %89 = arith.addf %87, %88 : vector<4x4xf32>
    %c0_51 = arith.constant 0 : index
    %c0_52 = arith.constant 0 : index
    %90 = vector.load %arg9[%c0_51, %c0_52] : memref<1x4xf32, #tpu.memory_space<vmem>>, vector<1x4xf32>
    %91 = vector.broadcast %90 : vector<1x4xf32> to vector<4x4xf32>
    %92 = arith.addf %89, %91 : vector<4x4xf32>
    %93 = math.tanh %92 : vector<4x4xf32>
    %94 = vector.extract_strided_slice %93 {offsets = [0, 0], sizes = [2, 4], strides = [1, 1]} : vector<4x4xf32> to vector<2x4xf32>
    %95 = vector.extract_strided_slice %93 {offsets = [2, 0], sizes = [2, 4], strides = [1, 1]} : vector<4x4xf32> to vector<2x4xf32>
    %96 = tpu.concatenate %94, %95 in 1 : vector<2x4xf32>, vector<2x4xf32> -> vector<2x8xf32>
    %c0_53 = arith.constant 0 : index
    %c0_54 = arith.constant 0 : index
    %97 = vector.load %arg10[%c0_53, %c0_54] : memref<8x64xbf16, #tpu.memory_space<vmem>>, vector<8x64xbf16>
    %98 = arith.truncf %96 : vector<2x8xf32> to vector<2x8xbf16>
    %cst_55 = arith.constant dense<0.000000e+00> : vector<2x64xf32>
    %99 = tpu.matmul %98, %97, %cst_55 {dimension_numbers = #tpu.dot_dimension_numbers<[1], [0], [0], [1], [0, 0, 1, 1], [], []>} : vector<2x8xbf16>, vector<8x64xbf16>, vector<2x64xf32> -> vector<2x64xf32>
    %c0_56 = arith.constant 0 : index
    %c0_57 = arith.constant 0 : index
    %100 = vector.load %arg11[%c0_56, %c0_57] : memref<1x64xf32, #tpu.memory_space<vmem>>, vector<1x64xf32>
    %101 = vector.broadcast %100 : vector<1x64xf32> to vector<2x64xf32>
    %102 = arith.addf %99, %101 : vector<2x64xf32>
    %103 = math.tanh %102 : vector<2x64xf32>
    %c0_58 = arith.constant 0 : index
    %c0_59 = arith.constant 0 : index
    %104 = vector.load %arg12[%c0_58, %c0_59] : memref<64x7xbf16, #tpu.memory_space<vmem>>, vector<64x7xbf16>
    %105 = arith.truncf %103 : vector<2x64xf32> to vector<2x64xbf16>
    %cst_60 = arith.constant dense<0.000000e+00> : vector<2x7xf32>
    %106 = tpu.matmul %105, %104, %cst_60 {dimension_numbers = #tpu.dot_dimension_numbers<[1], [0], [0], [1], [0, 0, 1, 1], [], []>} : vector<2x64xbf16>, vector<64x7xbf16>, vector<2x7xf32> -> vector<2x7xf32>
    %c0_61 = arith.constant 0 : index
    %c0_62 = arith.constant 0 : index
    %107 = vector.load %arg13[%c0_61, %c0_62] : memref<1x7xf32, #tpu.memory_space<vmem>>, vector<1x7xf32>
    %108 = vector.broadcast %107 : vector<1x7xf32> to vector<2x7xf32>
    %109 = arith.addf %106, %108 : vector<2x7xf32>
    %110 = vector.extract_strided_slice %109 {offsets = [0, 0], sizes = [2, 6], strides = [1, 1]} : vector<2x7xf32> to vector<2x6xf32>
    %111 = vector.extract_strided_slice %109 {offsets = [0, 6], sizes = [2, 1], strides = [1, 1]} : vector<2x7xf32> to vector<2x1xf32>
    %112 = arith.negf %111 : vector<2x1xf32>
    %113 = math.exp %112 : vector<2x1xf32>
    %cst_63 = arith.constant 1.000000e+00 : f32
    %114 = vector.broadcast %cst_63 : f32 to vector<2x1xf32>
    %115 = arith.addf %114, %113 : vector<2x1xf32>
    %116 = arith.divf %114, %115 : vector<2x1xf32>
    %117 = tpu.concatenate %110, %116 in 1 : vector<2x6xf32>, vector<2x1xf32> -> vector<2x7xf32>
    %cst_64 = arith.constant 0.000000e+00 : f32
    %118 = vector.broadcast %cst_64 : f32 to vector<2x7xf32>
    %119 = tpu.concatenate %117, %118 in 0 : vector<2x7xf32>, vector<2x7xf32> -> vector<4x7xf32>
    %cst_65 = arith.constant 0.000000e+00 : f32
    %120 = vector.broadcast %cst_65 : f32 to vector<4x117xf32>
    %121 = tpu.concatenate %93, %119, %120 in 1 : vector<4x4xf32>, vector<4x7xf32>, vector<4x117xf32> -> vector<4x128xf32>
    %c0_66 = arith.constant 0 : index
    %c0_67 = arith.constant 0 : index
    %122 = vector.load %arg14[%c0_66, %c0_67] : memref<4x128xf32, #tpu.memory_space<vmem>>, vector<4x128xf32>
    tpu.vector_store %arg14[%c0_66, %c0_67], %121 {strides = array<i32>} : memref<4x128xf32, #tpu.memory_space<vmem>>, vector<4x128xf32>,
    return
  }
}

</mosaic_0001>

<bundles_post_ra>
// kernel: featurenet_apply.1
= control target key start
LH: loop header
LB: loop body
LE: loop exit
PB: predicated region body
PF: predicated region fallthrough
CT: control target
= control target key end

     0   :  { %v2755_v1 = vmov 0   ;;  %vm120_vm0 = vcmask 392192   ;;  %vm60_vm1 = vcmask 1043456   ;;  %vm2756_vm3 = vmmov 1   ;;  %s3537_s2 = inlined_call_operand.vmem [shape: bf16[3,48,256], index: 2, kind: input, shape index: {}]   ;;  %s3538_s0 = inlined_call_operand.vmem [shape: f32[32,48], index: 0, kind: input, shape index: {}]   ;;  %s3539_s1 = inlined_call_operand.vmem [shape: f32[32,48], index: 1, kind: input, shape index: {}]   ;;  %s3540_s4 = inlined_call_operand.vmem [shape: bf16[3,256,256], index: 4, kind: input, shape index: {}]   ;;  %s3541_s3 = inlined_call_operand.vmem [shape: f32[1,256], index: 3, kind: input, shape index: {}]   ;;  %s3542_s6 = inlined_call_operand.vmem [shape: bf16[3,256,128], index: 6, kind: input, shape index: {}]   ;;  %s3543_s5 = inlined_call_operand.vmem [shape: f32[1,256], index: 5, kind: input, shape index: {}]   ;;  %s3544_s8 = inlined_call_operand.vmem [shape: bf16[128,4], index: 8, kind: input, shape index: {}]   ;;  %s3545_s7 = inlined_call_operand.vmem [shape: f32[1,128], index: 7, kind: input, shape index: {}]   ;;  %s3546_s10 = inlined_call_operand.vmem [shape: bf16[8,64], index: 10, kind: input, shape index: {}]   ;;  %s3547_s9 = inlined_call_operand.vmem [shape: f32[1,4], index: 9, kind: input, shape index: {}]   ;;  %s3548_s12 = inlined_call_operand.vmem [shape: bf16[64,7], index: 12, kind: input, shape index: {}]   ;;  %s3549_s11 = inlined_call_operand.vmem [shape: f32[1,64], index: 11, kind: input, shape index: {}]   ;;  %s3550_s13 = inlined_call_operand.vmem [shape: f32[1,7], index: 13, kind: input, shape index: {}]   ;;  %s3551_s14 = inlined_call_operand.vmem [shape: f32[4,128], index: 14, kind: output, shape index: {}]  }
   0x1   :  { %v2516_v0 = vld [vmem:[%s3537_s2 + $0x34] ss:$8 sps:$4 sm:$0xff]   ;;  %159 = vmatprep.mubr.bf16.mxu0 %v2755_v1  ;;  %v2518_v2 = vld [vmem:[%s3537_s2 + $0x30] ss:$8 sps:$4 sm:$0xff]   ;;  %v2519_v3 = vld [vmem:[%s3537_s2 + $0x44] ss:$8 sps:$4 sm:$0xff]  }
   0x2   :  { %127 = vmatprep.subr.bf16.mxu0 %v2516_v0  ;;  %v2521_v4 = vld [vmem:[%s3537_s2 + $0x40] ss:$8 sps:$4 sm:$0xff]   ;;  %v2522_v5 = vld [vmem:[%s3537_s2 + $0x54] ss:$8 sps:$4 sm:$0xff]   ;;  %v2524_v6 = vld [vmem:[%s3537_s2 + $0x50] ss:$8 sps:$4 sm:$0xff]  }
   0x3   :  { %128 = vmatpush1.bf16.msra.mxu0 %v2518_v2  ;;  %v48_v7 = vld [vmem:[%s3538_s0] sm:$0xff]  ;;  %v49_v8 = vld [vmem:[%s3538_s0 + $0x8] sm:$0xff]  ;;  %v2530_v12 = vld [vmem:[%s3537_s2 + $0x14] ss:$8 sps:$4 sm:$0xff]   ;;  %vm2758_vm6 = vmmov 0   ;;  %vm1857_vm7 = vcmask 31744  }
   0x4   :  { %129 = vmatprep.subr.bf16.mxu0 %v2519_v3  ;;  %v2527_v9 = vld [vmem:[%s3537_s2 + $0x4] ss:$8 sps:$4 sm:$0xff]   ;;  %v88_v10 = vpack.c.bf16 %v49_v8, %v48_v7  ;;  %v2525_v11 = vld [vmem:[%s3537_s2] ss:$8 sps:$4 sm:$0xff]   ;;  %v2528_v13 = vld [vmem:[%s3537_s2 + $0x10] ss:$8 sps:$4 sm:$0xff]  }
   0x5   :  { %v50_v14 = vld [vmem:[%s3538_s0 + $0x10] sm:$0xff]  ;;  %v51_v15 = vld [vmem:[%s3538_s0 + $0x18] sm:$0xff]  ;;  %v2533_v16 = vld [vmem:[%s3537_s2 + $0x24] ss:$8 sps:$4 sm:$0xff]   ;;  %vm1868_vm8 = vcmask 64512   ;;  %vm1956_vm9 = vcmask 523264  }
   0x6   :  { %v2885_v17 = vld [vmem:[%s3539_s1] sm:$0xff]  ;;  %v2890_v18 = vld [vmem:[%s3539_s1 + $0x8] sm:$0xff]  ;;  %v2546_v21 = vld [vmem:[%s3540_s4 + $0x114] ss:$8 sps:$4 sm:$0xff]   ;;  %v89_v22 = vpack.c.bf16 %v51_v15, %v50_v14  ;;  %vm2006_vm10 = vcmask 48128   ;;  %vm2008_vm11 = vcmask 1041408  }
   0x7   :  { %130 = vmatpush1.bf16.msra.mxu0 %v2521_v4  ;;  %v2543_v19 = vld [vmem:[%s3540_s4 + $0x104] ss:$8 sps:$4 sm:$0xff]   ;;  %v2545_v20 = vld [vmem:[%s3540_s4 + $0x100] ss:$8 sps:$4 sm:$0xff]   ;;  %v2548_v24 = vld [vmem:[%s3540_s4 + $0x110] ss:$8 sps:$4 sm:$0xff]   ;;  %v276_v56 = vpack.c.bf16 %v2890_v18, %v2885_v17 }
   0x8   :  { %131 = vmatprep.subr.bf16.mxu0 %v2522_v5  ;;  %680 = vmatprep.subr.bf16.mxu1 %v2543_v19  ;;  %v2531_v23 = vld [vmem:[%s3537_s2 + $0x20] ss:$8 sps:$4 sm:$0xff]   ;;  %v61_v25 = vrot.slane %v2885_v17, 4  ;;  %v62_v26 = vrot.slane %v2890_v18, 4  ;;  %v2536_v27 = vld [vmem:[%s3537_s2 + $0x64] ss:$8 sps:$4 sm:$0xff]   ;;  %vm3069_vm2 = vmneg %vm60_vm1 }
   0x9   :  { %681 = vmatpush1.bf16.msra.mxu1 %v2545_v20  ;;  %v2549_v28 = vld [vmem:[%s3540_s4 + $0x124] ss:$8 sps:$4 sm:$0xff]   ;;  %v2551_v29 = vld [vmem:[%s3540_s4 + $0x120] ss:$8 sps:$4 sm:$0xff]   ;;  %v54_v32 = vld [vmem:[%s3539_s1 + $0x10] sm:$0xff]  ;;  %vm2015_vm12 = vcmask 89088  }
   0xa   :  { %682 = vmatprep.subr.bf16.mxu1 %v2546_v21  ;;  %v63_v30 = vsel %vm60_vm1, %v61_v25, %v62_v26  ;;  %v72_v31 = vsel %vm60_vm1, 0.0, %v61_v25  ;;  %v2552_v33 = vld [vmem:[%s3540_s4 + $0x134] ss:$8 sps:$4 sm:$0xff]   ;;  %v2534_v35 = vld [vmem:[%s3537_s2 + $0x60] ss:$8 sps:$4 sm:$0xff]   ;;  %v64_v39 = vrot.slane %v54_v32, 4  ;;  %vm3085_vm4 = vmpackc.low %vm2756_vm3, %vm3069_vm2 }
   0xb   :  { %132 = vmatpush1.bf16.msra.mxu0 %v2524_v6  ;;  %v55_v34 = vld [vmem:[%s3539_s1 + $0x18] sm:$0xff]  ;;  %v79_v36 = vpack.c.bf16 %v63_v30, %v72_v31  ;;  %v2555_v41 = vld [vmem:[%s3540_s4 + $0x144] ss:$8 sps:$4 sm:$0xff]   ;;  %v2557_v42 = vld [vmem:[%s3540_s4 + $0x140] ss:$8 sps:$4 sm:$0xff]  }
   0xc   :  { %216 = vmatprep.subr.bf16.mxu0 %v2527_v9  ;;  %v2539_v37 = vld [vmem:[%s3537_s2 + $0x74] ss:$8 sps:$4 sm:$0xff]   ;;  %v2554_v38 = vld [vmem:[%s3540_s4 + $0x130] ss:$8 sps:$4 sm:$0xff]   ;;  %v66_v40 = vrot.slane %v55_v34, 4  ;;  %v65_v46 = vsel %vm60_vm1, %v62_v26, %v64_v39  ;;  %v277_v61 = vpack.c.bf16 %v55_v34, %v54_v32  ;;  %vm2292_vm5 = vmpackc.low %vm3069_vm2, %vm3069_vm2 }
   0xd   :  { %683 = vmatpush1.bf16.msra.mxu1 %v2548_v24  ;;  %v2537_v43 = vld [vmem:[%s3537_s2 + $0x70] ss:$8 sps:$4 sm:$0xff]   ;;  %v2558_v44 = vld [vmem:[%s3540_s4 + $0x154] ss:$8 sps:$4 sm:$0xff]   ;;  %v2542_v45 = vld [vmem:[%s3537_s2 + $0x84] ss:$8 sps:$4 sm:$0xff]  }
   0xe   :  { %2034 = vmatmul.mubr.msk.bf16.vlgmr.msra.gmra.mrb[0].mxu0 %vm120_vm0, %v88_v10  ;;  %684 = vmatprep.subr.bf16.mxu1 %v2549_v28  ;;  %v67_v47 = vsel %vm60_vm1, %v64_v39, %v66_v40  ;;  %v2560_v48 = vld [vmem:[%s3540_s4 + $0x150] ss:$8 sps:$4 sm:$0xff]   ;;  %v2540_v49 = vld [vmem:[%s3537_s2 + $0x80] ss:$8 sps:$4 sm:$0xff]   ;;  %v2561_v51 = vld [vmem:[%s3540_s4 + $0x164] ss:$8 sps:$4 sm:$0xff]   ;;  %v377_v10 = vlaneseq }
   0xf   :  { %217 = vmatpush1.bf16.msra.mxu0 %v2525_v11  ;;  %169 = vmatprep.mubr.bf16.mxu0 %v2755_v1  ;;  %v80_v50 = vpack.c.bf16 %v67_v47, %v65_v46  ;;  %v2563_v52 = vld [vmem:[%s3540_s4 + $0x160] ss:$8 sps:$4 sm:$0xff]   ;;  %v2564_v53 = vld [vmem:[%s3540_s4 + $0x174] ss:$8 sps:$4 sm:$0xff]   ;;  %v2566_v54 = vld [vmem:[%s3540_s4 + $0x170] ss:$8 sps:$4 sm:$0xff]  }
  0x10   :  { %218 = vmatprep.subr.bf16.mxu0 %v2530_v12  ;;  %v2567_v55 = vld [vmem:[%s3540_s4 + $0x184] ss:$8 sps:$4 sm:$0xff]   ;;  %v2569_v57 = vld [vmem:[%s3540_s4 + $0x180] ss:$8 sps:$4 sm:$0xff]   ;;  %v2570_v58 = vld [vmem:[%s3540_s4 + $0x194] ss:$8 sps:$4 sm:$0xff]  }
  0x11   :  { %685 = vmatpush1.bf16.msra.mxu1 %v2551_v29  ;;  %v2572_v59 = vld [vmem:[%s3540_s4 + $0x190] ss:$8 sps:$4 sm:$0xff]   ;;  %v2573_v60 = vld [vmem:[%s3540_s4 + $0x1a4] ss:$8 sps:$4 sm:$0xff]   ;;  %v2575_v62 = vld [vmem:[%s3540_s4 + $0x1a0] ss:$8 sps:$4 sm:$0xff]  }
  0x12   :  { %686 = vmatprep.subr.bf16.mxu1 %v2552_v33  ;;  %v2576_v63 = vld [vmem:[%s3540_s4 + $0x1b4] ss:$8 sps:$4 sm:$0xff]   ;;  %v2578_v0 = vld [vmem:[%s3540_s4 + $0x1b0] ss:$8 sps:$4 sm:$0xff]   ;;  %v2581_v2 = vld [vmem:[%s3540_s4 + $0x1c0] ss:$8 sps:$4 sm:$0xff]  }
  0x13   :  { %219 = vmatpush1.bf16.msra.mxu0 %v2528_v13  ;;  %v2582_v3 = vld [vmem:[%s3540_s4 + $0x1d4] ss:$8 sps:$4 sm:$0xff]   ;;  %v2584_v4 = vld [vmem:[%s3540_s4 + $0x1d0] ss:$8 sps:$4 sm:$0xff]   ;;  %v2585_v5 = vld [vmem:[%s3540_s4 + $0x1e4] ss:$8 sps:$4 sm:$0xff]  }
  0x14   :  { %220 = vmatprep.subr.bf16.mxu0 %v2533_v16  ;;  %v2587_v6 = vld [vmem:[%s3540_s4 + $0x1e0] ss:$8 sps:$4 sm:$0xff]   ;;  %v2588_v7 = vld [vmem:[%s3540_s4 + $0x1f4] ss:$8 sps:$4 sm:$0xff]   ;;  %v2590_v8 = vld [vmem:[%s3540_s4 + $0x1f0] ss:$8 sps:$4 sm:$0xff]  }
  0x15   :  { %687 = vmatpush1.bf16.msra.mxu1 %v2554_v38  ;;  %v2593_v9 = vld [vmem:[%s3540_s4 + $0x4] ss:$8 sps:$4 sm:$0xff]   ;;  %v3036_v11 = vshrl.u32 %v377_v10, 7  ;;  %v375_v13 = vld [vmem:[%s3541_s3] sm:$0x3] }
  0x16   :  { %2035 = vmatmul.mubr.msk.bf16.gmra.mrb[4].mxu0 %vm120_vm0, %v89_v22  ;;  %688 = vmatprep.subr.bf16.mxu1 %v2555_v41  ;;  %v2599_v10 = vld [vmem:[%s3540_s4 + $0x24] ss:$8 sps:$4 sm:$0xff]  }
  0x17   :  { %221 = vmatpush1.bf16.msra.mxu0 %v2531_v23  ;;  %248 = vmatprep.mubr.bf16.mxu0 %v2755_v1  ;;  %v379_v12 = vsub.s32 0, %v3036_v11  ;;  %v383_v14 = vsub.s32 1, %v3036_v11 }
  0x18   :  { %314 = vmatprep.subr.bf16.mxu0 %v2536_v27 }
  0x19   :  { %689 = vmatpush1.bf16.msra.mxu1 %v2557_v42  ;;  %v380_v15 = vrot.slane %v375_v13, %v379_v12  ;;  %v384_v16 = vrot.slane %v375_v13, %v383_v14  ;;  %v2687_v13 = vld [vmem:[%s3542_s6 + $0xc0] sm:$0xff]  }
  0x1a   :  { %690 = vmatprep.subr.bf16.mxu1 %v2558_v44 }
  0x1d   :  { %691 = vmatpush1.bf16.msra.mxu1 %v2560_v48 }
  0x1e   :  { %2042 = vmatmul.mubr.msk.bf16.vlgmr.msra.gmra.mrb[0].mxu0 %vm120_vm0, %v79_v36  ;;  %692 = vmatprep.subr.bf16.mxu1 %v2561_v51 }
  0x1f   :  { %315 = vmatpush1.bf16.msra.mxu0 %v2534_v35  ;;  %258 = vmatprep.mubr.bf16.mxu0 %v2755_v1 }
  0x20   :  { %316 = vmatprep.subr.bf16.mxu0 %v2539_v37 }
  0x21   :  { %693 = vmatpush1.bf16.msra.mxu1 %v2563_v52 }
  0x22   :  { %694 = vmatprep.subr.bf16.mxu1 %v2564_v53 }
  0x23   :  { %317 = vmatpush1.bf16.msra.mxu0 %v2537_v43 }
  0x24   :  { %318 = vmatprep.subr.bf16.mxu0 %v2542_v45 }
  0x25   :  { %695 = vmatpush1.bf16.msra.mxu1 %v2566_v54 }
  0x26   :  { %2043 = vmatmul.mubr.msk.bf16.gmra.mrb[4].mxu0 %vm120_vm0, %v80_v50  ;;  %696 = vmatprep.subr.bf16.mxu1 %v2567_v55 }
  0x27   :  { %319 = vmatpush1.bf16.msra.mxu0 %v2540_v49  ;;  %346 = vmatprep.mubr.bf16.mxu0 %v2755_v1 }
  0x28   :  { %2367 = vmatprep.subr.bf16.mxu0 %v2687_v13  ;;  %v2671_v13 = vld [vmem:[%s3540_s4 + $0x2a4] ss:$8 sps:$4 sm:$0xff]  }
  0x29   :  { %697 = vmatpush1.bf16.msra.mxu1 %v2569_v57 }
  0x2a   :  { %698 = vmatprep.subr.bf16.mxu1 %v2570_v58 }
  0x2d   :  { %699 = vmatpush1.bf16.msra.mxu1 %v2572_v59 }
  0x2e   :  { %2056 = vmatmul.mubr.msk.bf16.vlgmr.msra.gmra.mrb[0].mxu0 %vm120_vm0, %v276_v56  ;;  %700 = vmatprep.subr.bf16.mxu1 %v2573_v60 }
  0x2f   :  { %356 = vmatprep.mubr.bf16.mxu0 %v2755_v1  ;;  %v2579_v1 = vld [vmem:[%s3540_s4 + $0x1c4] ss:$8 sps:$4 sm:$0xff]  }
  0x31   :  { %701 = vmatpush1.bf16.msra.mxu1 %v2575_v62 }
  0x32   :  { %702 = vmatprep.subr.bf16.mxu1 %v2576_v63 }
  0x35   :  { %703 = vmatpush1.bf16.msra.mxu1 %v2578_v0 }
  0x36   :  { %2057 = vmatmul.mubr.msk.bf16.gmra.mrb[4].mxu0 %vm120_vm0, %v277_v61  ;;  %704 = vmatprep.subr.bf16.mxu1 %v2579_v1  ;;  %v2725_v61 = vld [vmem:[%s3542_s6 + $0x158] sm:$0xff]  }
  0x39   :  { %705 = vmatpush1.bf16.msra.mxu1 %v2581_v2 }
  0x3a   :  { %706 = vmatprep.subr.bf16.mxu1 %v2582_v3  ;;  %v2591_v3 = vld [vmem:[%s3540_s4] ss:$8 sps:$4 sm:$0xff]  }
  0x3d   :  { %707 = vmatpush1.bf16.msra.mxu1 %v2584_v4 }
  0x3e   :  { %708 = vmatprep.subr.bf16.mxu1 %v2585_v5 }
  0x41   :  { %709 = vmatpush1.bf16.msra.mxu1 %v2587_v6  ;;  %v2660_v6 = vld [vmem:[%s3540_s4 + $0x270] ss:$8 sps:$4 sm:$0xff]  }
  0x42   :  { %710 = vmatprep.subr.bf16.mxu1 %v2588_v7 }
  0x45   :  { %711 = vmatpush1.bf16.msra.mxu1 %v2590_v8  ;;  %v2596_v8 = vld [vmem:[%s3540_s4 + $0x14] ss:$8 sps:$4 sm:$0xff]  }
  0x46   :  { %883 = vmatprep.subr.bf16.mxu1 %v2593_v9  ;;  %v2594_v9 = vld [vmem:[%s3540_s4 + $0x10] ss:$8 sps:$4 sm:$0xff]  }
 0x101   :  { %v348_v17 = vpop.f32.mrb[0].mxu0 }
 0x102   :  { %v387_v18 = vadd.f32 %v380_v15, %v348_v17  ;;  %v350_v19 = vpop.f32.mrb[1].mxu0  ;;  %v2689_v17 = vld [vmem:[%s3542_s6 + $0xc8] sm:$0xff]  }
 0x103   :  { %v388_v20 = vadd.f32 %v384_v16, %v350_v19  ;;  %v352_v21 = vpop.f32.mrb[2].mxu0  ;;  %v2691_v19 = vld [vmem:[%s3542_s6 + $0xd0] sm:$0xff]  }
 0x104   :  { %v395_v22 = vmax.f32 %v387_v18, 0.0  ;;  %v389_v23 = vadd.f32 %v380_v15, %v352_v21  ;;  %v354_v24 = vpop.f32.mrb[3].mxu0  ;;  %v2690_v18 = vld [vmem:[%s3542_s6 + $0x88] sm:$0xff]   ;;  %v2600_v21 = vld [vmem:[%s3540_s4 + $0x30] ss:$8 sps:$4 sm:$0xff]  }
 0x105   :  { %v396_v25 = vmax.f32 %v388_v20, 0.0  ;;  %v390_v26 = vadd.f32 %v384_v16, %v354_v24  ;;  %v2602_v20 = vld [vmem:[%s3540_s4 + $0x34] ss:$8 sps:$4 sm:$0xff]  }
 0x106   :  { %v421_v27 = vrot.slane %v395_v22, 4  ;;  %v397_v28 = vmax.f32 %v389_v23, 0.0  ;;  %v2692_v23 = vld [vmem:[%s3542_s6 + $0x90] sm:$0xff]   ;;  %v2693_v24 = vld [vmem:[%s3542_s6 + $0xd8] sm:$0xff]  }
 0x107   :  { %v422_v29 = vrot.slane %v396_v25, 4  ;;  %v398_v30 = vmax.f32 %v390_v26, 0.0  ;;  %v2603_v26 = vld [vmem:[%s3540_s4 + $0x40] ss:$8 sps:$4 sm:$0xff]  }
 0x108   :  { %v405_v31 = vrot.slane %v397_v28, 4  ;;  %v3048_v32 = vsel %vm60_vm1, %v421_v27, %v397_v28  ;;  %v2695_v27 = vld [vmem:[%s3542_s6 + $0xe0] sm:$0xff]   ;;  %v2608_v28 = vld [vmem:[%s3540_s4 + $0x54] ss:$8 sps:$4 sm:$0xff]  }
 0x109   :  { %v406_v33 = vrot.slane %v398_v30, 4  ;;  %v3051_v34 = vsel %vm60_vm1, %v422_v29, %v398_v30  ;;  %v358_v35 = vpop.f32.mrb[4].mxu0  ;;  %v439_v51 = vrot.slane %v3048_v32, 4  ;;  %v2696_v29 = vld [vmem:[%s3542_s6 + $0xa0] sm:$0xff]   ;;  %v2606_v30 = vld [vmem:[%s3540_s4 + $0x50] ss:$8 sps:$4 sm:$0xff]  }
 0x10a   :  { %v391_v36 = vadd.f32 %v380_v15, %v358_v35  ;;  %v360_v37 = vpop.f32.mrb[5].mxu0  ;;  %v415_v38 = vsel %vm60_vm1, %v395_v22, %v405_v31  ;;  %v440_v58 = vrot.slane %v3051_v34, 4  ;;  %v2605_v22 = vld [vmem:[%s3540_s4 + $0x44] ss:$8 sps:$4 sm:$0xff]   ;;  %v2614_v35 = vld [vmem:[%s3540_s4 + $0x74] ss:$8 sps:$4 sm:$0xff]  }
 0x10b   :  { %v392_v39 = vadd.f32 %v384_v16, %v360_v37  ;;  %v362_v40 = vpop.f32.mrb[6].mxu0  ;;  %v416_v41 = vsel %vm60_vm1, %v396_v25, %v406_v33  ;;  %v2694_v25 = vld [vmem:[%s3542_s6 + $0x98] sm:$0xff]   ;;  %v2611_v31 = vld [vmem:[%s3540_s4 + $0x64] ss:$8 sps:$4 sm:$0xff]   ;;  %v2609_v33 = vld [vmem:[%s3540_s4 + $0x60] ss:$8 sps:$4 sm:$0xff]  }
 0x10c   :  { %v399_v42 = vmax.f32 %v391_v36, 0.0  ;;  %v393_v43 = vadd.f32 %v380_v15, %v362_v40  ;;  %v364_v44 = vpop.f32.mrb[7].mxu0  ;;  %v2688_v15 = vld [vmem:[%s3542_s6 + $0x80] sm:$0xff]   ;;  %v2612_v36 = vld [vmem:[%s3540_s4 + $0x70] ss:$8 sps:$4 sm:$0xff]  }
 0x10d   :  { %v400_v45 = vmax.f32 %v392_v39, 0.0  ;;  %v394_v46 = vadd.f32 %v384_v16, %v364_v44  ;;  %v2597_v16 = vld [vmem:[%s3540_s4 + $0x20] ss:$8 sps:$4 sm:$0xff]   ;;  %2368 = vmatpush3.bf16.msra.mxu0 %v2688_v15  ;;  %v2617_v37 = vld [vmem:[%s3540_s4 + $0x84] ss:$8 sps:$4 sm:$0xff]  }
 0x10e   :  { %v427_v47 = vrot.slane %v399_v42, 4  ;;  %v401_v48 = vmax.f32 %v393_v43, 0.0  ;;  %2369 = vmatprep.subr.bf16.mxu0 %v2689_v17  ;;  %v2620_v39 = vld [vmem:[%s3540_s4 + $0x94] ss:$8 sps:$4 sm:$0xff]   ;;  %v2618_v40 = vld [vmem:[%s3540_s4 + $0x90] ss:$8 sps:$4 sm:$0xff]  }
 0x10f   :  { %v428_v49 = vrot.slane %v400_v45, 4  ;;  %v402_v50 = vmax.f32 %v394_v46, 0.0  ;;  %v2626_v43 = vld [vmem:[%s3540_s4 + $0xb4] ss:$8 sps:$4 sm:$0xff]   ;;  %v2624_v44 = vld [vmem:[%s3540_s4 + $0xb0] ss:$8 sps:$4 sm:$0xff]  }
 0x110   :  { %v411_v52 = vrot.slane %v401_v48, 4  ;;  %v3057_v53 = vsel %vm60_vm1, %v427_v47, %v401_v48  ;;  %v2627_v46 = vld [vmem:[%s3540_s4 + $0xc0] ss:$8 sps:$4 sm:$0xff]   ;;  %v2632_v47 = vld [vmem:[%s3540_s4 + $0xd4] ss:$8 sps:$4 sm:$0xff]  }
 0x111   :  { %v441_v54 = vrot.slane %v3057_v53, 4  ;;  %v959_v55 = vpack.c.bf16 %v3057_v53, %v3048_v32  ;;  %v412_v56 = vrot.slane %v402_v50, 4  ;;  %v3063_v57 = vsel %vm60_vm1, %v428_v49, %v402_v50  ;;  %2370 = vmatpush3.bf16.msra.mxu0 %v2690_v18  ;;  %v2630_v48 = vld [vmem:[%s3540_s4 + $0xd0] ss:$8 sps:$4 sm:$0xff]   ;;  %v2635_v49 = vld [vmem:[%s3540_s4 + $0xe4] ss:$8 sps:$4 sm:$0xff]  }
 0x112   :  { %v443_v59 = vrot.slane %v3063_v57, 4  ;;  %v417_v60 = vsel %vm60_vm1, %v399_v42, %v411_v52  ;;  %v960_v62 = vpack.c.bf16 %v3063_v57, %v3051_v34  ;;  %2371 = vmatprep.subr.bf16.mxu0 %v2691_v19  ;;  %v2621_v42 = vld [vmem:[%s3540_s4 + $0xa0] ss:$8 sps:$4 sm:$0xff]   ;;  %v2636_v52 = vld [vmem:[%s3540_s4 + $0xf0] ss:$8 sps:$4 sm:$0xff]  }
 0x113   :  { %v442_v63 = vsel %vm60_vm1, %v439_v51, %v441_v54  ;;  %v418_v0 = vsel %vm60_vm1, %v400_v45, %v412_v56  ;;  %v518_v1 = vpack.c.bf16 %v417_v60, %v415_v38  ;;  %v2615_v38 = vld [vmem:[%s3540_s4 + $0x80] ss:$8 sps:$4 sm:$0xff]   ;;  %v2629_v45 = vld [vmem:[%s3540_s4 + $0xc4] ss:$8 sps:$4 sm:$0xff]   ;;  %v2650_v34 = vld [vmem:[%s3540_s4 + $0x234] ss:$8 sps:$4 sm:$0xff]  }
 0x114   :  { %v519_v2 = vpack.c.bf16 %v418_v0, %v416_v41  ;;  %v444_v4 = vsel %vm60_vm1, %v440_v58, %v443_v59  ;;  %v3081_v5 = vpack.c.bf16 %v442_v63, %v439_v51  ;;  %v2623_v41 = vld [vmem:[%s3540_s4 + $0xa4] ss:$8 sps:$4 sm:$0xff]   ;;  %v2633_v50 = vld [vmem:[%s3540_s4 + $0xe0] ss:$8 sps:$4 sm:$0xff]   ;;  %v2638_v51 = vld [vmem:[%s3540_s4 + $0xf4] ss:$8 sps:$4 sm:$0xff]  }
 0x115   :  { %v2156_v7 = vpack.c.bf16 %v444_v4, %v440_v58  ;;  %2372 = vmatpush3.bf16.msra.mxu0 %v2692_v23  ;;  %v2641_v54 = vld [vmem:[%s3540_s4 + $0x204] ss:$8 sps:$4 sm:$0xff]   ;;  %v2639_v56 = vld [vmem:[%s3540_s4 + $0x200] ss:$8 sps:$4 sm:$0xff]   ;;  %v2644_v58 = vld [vmem:[%s3540_s4 + $0x214] ss:$8 sps:$4 sm:$0xff]  }
 0x116   :  { %712 = vmatprep.mubr.bf16.mxu1 %v519_v2  ;;  %2373 = vmatprep.subr.bf16.mxu0 %v2693_v24  ;;  %v2642_v59 = vld [vmem:[%s3540_s4 + $0x210] ss:$8 sps:$4 sm:$0xff]   ;;  %v2647_v60 = vld [vmem:[%s3540_s4 + $0x224] ss:$8 sps:$4 sm:$0xff]   ;;  %v2645_v63 = vld [vmem:[%s3540_s4 + $0x220] ss:$8 sps:$4 sm:$0xff]  }
 0x117   :  { %713 = vmatmul.mubr.bf16.vlgmr.msra.gmra.mrb[0].mxu1 %v518_v1  ;;  %v2648_v57 = vld [vmem:[%s3540_s4 + $0x230] ss:$8 sps:$4 sm:$0xff]   ;;  %v2651_v0 = vld [vmem:[%s3540_s4 + $0x240] ss:$8 sps:$4 sm:$0xff]   ;;  %v2656_v1 = vld [vmem:[%s3540_s4 + $0x254] ss:$8 sps:$4 sm:$0xff]  }
 0x118   :  { %884 = vmatpush1.bf16.msra.mxu1 %v2591_v3  ;;  %2157 = vmatprep.mubr.msk.bf16.mxu1 %vm3085_vm4, %v2156_v7  ;;  %v2654_v2 = vld [vmem:[%s3540_s4 + $0x250] ss:$8 sps:$4 sm:$0xff]   ;;  %v2659_v3 = vld [vmem:[%s3540_s4 + $0x264] ss:$8 sps:$4 sm:$0xff]   ;;  %v2657_v4 = vld [vmem:[%s3540_s4 + $0x260] ss:$8 sps:$4 sm:$0xff]  }
 0x119   :  { %885 = vmatprep.subr.bf16.mxu1 %v2596_v8  ;;  %2374 = vmatpush3.bf16.msra.mxu0 %v2694_v25  ;;  %v2665_v7 = vld [vmem:[%s3540_s4 + $0x284] ss:$8 sps:$4 sm:$0xff]   ;;  %v2663_v8 = vld [vmem:[%s3540_s4 + $0x280] ss:$8 sps:$4 sm:$0xff]   ;;  %v2672_v17 = vld [vmem:[%s3540_s4 + $0x2b0] ss:$8 sps:$4 sm:$0xff]  }
 0x11a   :  { %2375 = vmatprep.subr.bf16.mxu0 %v2695_v27  ;;  %v2669_v15 = vld [vmem:[%s3540_s4 + $0x2a0] ss:$8 sps:$4 sm:$0xff]   ;;  %v2677_v18 = vld [vmem:[%s3540_s4 + $0x2c4] ss:$8 sps:$4 sm:$0xff]   ;;  %v2686_v24 = vld [vmem:[%s3540_s4 + $0x2f4] ss:$8 sps:$4 sm:$0xff]  }
 0x11b   :  { %v2675_v19 = vld [vmem:[%s3540_s4 + $0x2c0] ss:$8 sps:$4 sm:$0xff]   ;;  %v2684_v25 = vld [vmem:[%s3540_s4 + $0x2f0] ss:$8 sps:$4 sm:$0xff]  }
 0x11c   :  { %886 = vmatpush1.bf16.msra.mxu1 %v2594_v9  ;;  %v2668_v9 = vld [vmem:[%s3540_s4 + $0x294] ss:$8 sps:$4 sm:$0xff]   ;;  %v2681_v23 = vld [vmem:[%s3540_s4 + $0x2e0] ss:$8 sps:$4 sm:$0xff]  }
 0x11d   :  { %887 = vmatprep.subr.bf16.mxu1 %v2599_v10  ;;  %2376 = vmatpush3.bf16.msra.mxu0 %v2696_v29  ;;  %v2666_v10 = vld [vmem:[%s3540_s4 + $0x290] ss:$8 sps:$4 sm:$0xff]   ;;  %v2698_v27 = vld [vmem:[%s3542_s6 + $0xa8] sm:$0xff]  }
 0x11e   :  { %v2700_v29 = vld [vmem:[%s3542_s6 + $0xb0] sm:$0xff]   ;;  %v2701_v32 = vld [vmem:[%s3542_s6 + $0xf8] sm:$0xff]  }
 0x11f   :  { %v2702_v53 = vld [vmem:[%s3542_s6 + $0xb8] sm:$0xff]  }
 0x120   :  { %888 = vmatpush1.bf16.msra.mxu1 %v2597_v16  ;;  %v2674_v16 = vld [vmem:[%s3540_s4 + $0x2b4] ss:$8 sps:$4 sm:$0xff]  }
 0x121   :  { %889 = vmatprep.subr.bf16.mxu1 %v2602_v20  ;;  %v2680_v20 = vld [vmem:[%s3540_s4 + $0x2d4] ss:$8 sps:$4 sm:$0xff]  }
 0x124   :  { %890 = vmatpush1.bf16.msra.mxu1 %v2600_v21  ;;  %v2678_v21 = vld [vmem:[%s3540_s4 + $0x2d0] ss:$8 sps:$4 sm:$0xff]  }
 0x125   :  { %891 = vmatprep.subr.bf16.mxu1 %v2605_v22  ;;  %v2683_v22 = vld [vmem:[%s3540_s4 + $0x2e4] ss:$8 sps:$4 sm:$0xff]  }
 0x128   :  { %892 = vmatpush1.bf16.msra.mxu1 %v2603_v26  ;;  %v2697_v26 = vld [vmem:[%s3542_s6 + $0xe8] sm:$0xff]  }
 0x129   :  { %893 = vmatprep.subr.bf16.mxu1 %v2608_v28  ;;  %2377 = vmatprep.subr.bf16.mxu0 %v2697_v26  ;;  %v2699_v28 = vld [vmem:[%s3542_s6 + $0xf0] sm:$0xff]  }
 0x12a   :  { %2378 = vmatpush3.bf16.msra.mxu0 %v2698_v27  ;;  %v2731_v26 = vld [vmem:[%s3542_s6 + $0x170] sm:$0xff]  }
 0x12b   :  { %2379 = vmatprep.subr.bf16.mxu0 %v2699_v28  ;;  %v2732_v27 = vld [vmem:[%s3542_s6 + $0x130] sm:$0xff]   ;;  %v2733_v28 = vld [vmem:[%s3542_s6 + $0x178] sm:$0xff]  }
 0x12c   :  { %894 = vmatpush1.bf16.msra.mxu1 %v2606_v30  ;;  %v1168_v30 = vld [vmem:[%s3543_s5] sm:$0x3] }
 0x12d   :  { %895 = vmatprep.subr.bf16.mxu1 %v2611_v31  ;;  %v1173_v31 = vrot.slane %v1168_v30, %v379_v12 }
 0x12e   :  { %2380 = vmatpush3.bf16.msra.mxu0 %v2700_v29  ;;  %v2734_v29 = vld [vmem:[%s3542_s6 + $0x138] sm:$0xff]  }
 0x12f   :  { %2381 = vmatprep.subr.bf16.mxu0 %v2701_v32 }
 0x130   :  { %896 = vmatpush1.bf16.msra.mxu1 %v2609_v33  ;;  %v1177_v33 = vrot.slane %v1168_v30, %v383_v14  ;;  %v2736_v30 = vld [vmem:[%s3544_s8 + $0x8] sm:$0xff]  }
 0x131   :  { %897 = vmatprep.subr.bf16.mxu1 %v2614_v35 }
 0x132   :  { %2382 = vmatpush3.bf16.msra.mxu0 %v2702_v53  ;;  %v2757_v53 = vmov 0.0  }
 0x134   :  { %898 = vmatpush1.bf16.msra.mxu1 %v2612_v36 }
 0x135   :  { %899 = vmatprep.subr.bf16.mxu1 %v2617_v37 }
 0x138   :  { %900 = vmatpush1.bf16.msra.mxu1 %v2615_v38 }
 0x139   :  { %901 = vmatprep.subr.bf16.mxu1 %v2620_v39 }
 0x13c   :  { %902 = vmatpush1.bf16.msra.mxu1 %v2618_v40 }
 0x13d   :  { %903 = vmatprep.subr.bf16.mxu1 %v2623_v41 }
 0x140   :  { %904 = vmatpush1.bf16.msra.mxu1 %v2621_v42 }
 0x141   :  { %905 = vmatprep.subr.bf16.mxu1 %v2626_v43 }
 0x144   :  { %906 = vmatpush1.bf16.msra.mxu1 %v2624_v44 }
 0x145   :  { %907 = vmatprep.subr.bf16.mxu1 %v2629_v45 }
 0x148   :  { %908 = vmatpush1.bf16.msra.mxu1 %v2627_v46 }
 0x149   :  { %909 = vmatprep.subr.bf16.mxu1 %v2632_v47 }
 0x14c   :  { %910 = vmatpush1.bf16.msra.mxu1 %v2630_v48 }
 0x14d   :  { %911 = vmatprep.subr.bf16.mxu1 %v2635_v49 }
 0x150   :  { %912 = vmatpush1.bf16.msra.mxu1 %v2633_v50 }
 0x151   :  { %913 = vmatprep.subr.bf16.mxu1 %v2638_v51 }
 0x154   :  { %914 = vmatpush1.bf16.msra.mxu1 %v2636_v52 }
 0x155   :  { %1121 = vmatprep.subr.bf16.mxu1 %v2641_v54 }
 0x157   :  { %2161 = vmatmul.mubr.msk.bf16.vlgmr.msra.gmra.mrb[0].mxu1 %vm3085_vm4, %v3081_v5  ;;  %v2662_v5 = vld [vmem:[%s3540_s4 + $0x274] ss:$8 sps:$4 sm:$0xff]  }
 0x158   :  { %1122 = vmatpush1.bf16.msra.mxu1 %v2639_v56  ;;  %1153 = vmatprep.mubr.bf16.mxu1 %v960_v62  ;;  %v2653_v62 = vld [vmem:[%s3540_s4 + $0x244] ss:$8 sps:$4 sm:$0xff]  }
 0x159   :  { %1123 = vmatprep.subr.bf16.mxu1 %v2644_v58  ;;  %v2704_v56 = vld [vmem:[%s3542_s6] sm:$0xff]  }
 0x15c   :  { %1124 = vmatpush1.bf16.msra.mxu1 %v2642_v59  ;;  %v2705_v59 = vld [vmem:[%s3542_s6 + $0x48] sm:$0xff]  }
 0x15d   :  { %1125 = vmatprep.subr.bf16.mxu1 %v2647_v60 }
 0x160   :  { %1126 = vmatpush1.bf16.msra.mxu1 %v2645_v63  ;;  %v2706_v63 = vld [vmem:[%s3542_s6 + $0x8] sm:$0xff]  }
 0x161   :  { %1127 = vmatprep.subr.bf16.mxu1 %v2650_v34  ;;  %v2707_v34 = vld [vmem:[%s3542_s6 + $0x50] sm:$0xff]  }
 0x164   :  { %1128 = vmatpush1.bf16.msra.mxu1 %v2648_v57  ;;  %v2708_v57 = vld [vmem:[%s3542_s6 + $0x10] sm:$0xff]  }
 0x165   :  { %1129 = vmatprep.subr.bf16.mxu1 %v2653_v62  ;;  %v2709_v62 = vld [vmem:[%s3542_s6 + $0x58] sm:$0xff]  }
 0x168   :  { %1130 = vmatpush1.bf16.msra.mxu1 %v2651_v0  ;;  %v2710_v0 = vld [vmem:[%s3542_s6 + $0x18] sm:$0xff]  }
 0x169   :  { %1131 = vmatprep.subr.bf16.mxu1 %v2656_v1  ;;  %v2711_v1 = vld [vmem:[%s3542_s6 + $0x60] sm:$0xff]  }
 0x16c   :  { %1132 = vmatpush1.bf16.msra.mxu1 %v2654_v2  ;;  %v2712_v2 = vld [vmem:[%s3542_s6 + $0x20] sm:$0xff]  }
 0x16d   :  { %1133 = vmatprep.subr.bf16.mxu1 %v2659_v3  ;;  %v2713_v3 = vld [vmem:[%s3542_s6 + $0x68] sm:$0xff]  }
 0x170   :  { %1134 = vmatpush1.bf16.msra.mxu1 %v2657_v4  ;;  %v2714_v4 = vld [vmem:[%s3542_s6 + $0x28] sm:$0xff]  }
 0x171   :  { %1135 = vmatprep.subr.bf16.mxu1 %v2662_v5  ;;  %v2715_v5 = vld [vmem:[%s3542_s6 + $0x70] sm:$0xff]  }
 0x174   :  { %1136 = vmatpush1.bf16.msra.mxu1 %v2660_v6  ;;  %v2716_v6 = vld [vmem:[%s3542_s6 + $0x30] sm:$0xff]  }
 0x175   :  { %1137 = vmatprep.subr.bf16.mxu1 %v2665_v7  ;;  %v2717_v7 = vld [vmem:[%s3542_s6 + $0x78] sm:$0xff]  }
 0x178   :  { %1138 = vmatpush1.bf16.msra.mxu1 %v2663_v8  ;;  %v2718_v8 = vld [vmem:[%s3542_s6 + $0x38] sm:$0xff]  }
 0x179   :  { %1139 = vmatprep.subr.bf16.mxu1 %v2668_v9 }
 0x17c   :  { %1140 = vmatpush1.bf16.msra.mxu1 %v2666_v10  ;;  %v2719_v10 = vld [vmem:[%s3542_s6 + $0x140] sm:$0xff]  }
 0x17d   :  { %1141 = vmatprep.subr.bf16.mxu1 %v2671_v13  ;;  %v2720_v13 = vld [vmem:[%s3542_s6 + $0x100] sm:$0xff]  }
 0x180   :  { %1142 = vmatpush1.bf16.msra.mxu1 %v2669_v15 }
 0x181   :  { %1143 = vmatprep.subr.bf16.mxu1 %v2674_v16  ;;  %v2721_v16 = vld [vmem:[%s3542_s6 + $0x148] sm:$0xff]  }
 0x184   :  { %1144 = vmatpush1.bf16.msra.mxu1 %v2672_v17 }
 0x185   :  { %1145 = vmatprep.subr.bf16.mxu1 %v2677_v18  ;;  %v2722_v18 = vld [vmem:[%s3542_s6 + $0x108] sm:$0xff]  }
 0x188   :  { %1146 = vmatpush1.bf16.msra.mxu1 %v2675_v19  ;;  %v2723_v19 = vld [vmem:[%s3542_s6 + $0x150] sm:$0xff]  }
 0x189   :  { %1147 = vmatprep.subr.bf16.mxu1 %v2680_v20  ;;  %v2724_v20 = vld [vmem:[%s3542_s6 + $0x110] sm:$0xff]  }
 0x18c   :  { %1148 = vmatpush1.bf16.msra.mxu1 %v2678_v21  ;;  %v2726_v21 = vld [vmem:[%s3542_s6 + $0x118] sm:$0xff]  }
 0x18d   :  { %1149 = vmatprep.subr.bf16.mxu1 %v2683_v22  ;;  %v2727_v22 = vld [vmem:[%s3542_s6 + $0x160] sm:$0xff]  }
 0x190   :  { %1150 = vmatpush1.bf16.msra.mxu1 %v2681_v23  ;;  %v2728_v23 = vld [vmem:[%s3542_s6 + $0x120] sm:$0xff]  }
 0x191   :  { %1151 = vmatprep.subr.bf16.mxu1 %v2686_v24  ;;  %v2729_v24 = vld [vmem:[%s3542_s6 + $0x168] sm:$0xff]  }
 0x194   :  { %1152 = vmatpush1.bf16.msra.mxu1 %v2684_v25  ;;  %v2730_v25 = vld [vmem:[%s3542_s6 + $0x128] sm:$0xff]  }
 0x197   :  { %1154 = vmatmul.mubr.bf16.vlgmr.msra.gmra.mrb[0].mxu1 %v959_v55  ;;  %v2703_v55 = vld [vmem:[%s3542_s6 + $0x40] sm:$0xff]  }
 0x198   :  { %2389 = vmatprep.subr.bf16.mxu0 %v2703_v55  ;;  %v2735_v55 = vld [vmem:[%s3544_s8] sm:$0xff]  }
 0x26a   :  { %v1155_v35 = vpop.f32.mrb[0].mxu1 }
 0x26b   :  { %v1180_v36 = vadd.f32 %v1173_v31, %v1155_v35  ;;  %v1157_v37 = vpop.f32.mrb[1].mxu1  ;;  %v2739_v35 = vld [vmem:[%s3544_s8 + $0x20] sm:$0xff]  }
 0x26c   :  { %v1181_v38 = vadd.f32 %v1177_v33, %v1157_v37  ;;  %v1159_v39 = vpop.f32.mrb[2].mxu1  ;;  %v2741_v37 = vld [vmem:[%s3544_s8 + $0x30] sm:$0xff]  }
 0x26d   :  { %v1184_v40 = vmax.f32 %v1180_v36, 0.0  ;;  %v1182_v41 = vadd.f32 %v1173_v31, %v1159_v39  ;;  %v1161_v42 = vpop.f32.mrb[3].mxu1  ;;  %v2737_v31 = vld [vmem:[%s3544_s8 + $0x10] sm:$0xff]   ;;  %v2740_v36 = vld [vmem:[%s3544_s8 + $0x28] sm:$0xff]  }
 0x26e   :  { %v1185_v43 = vmax.f32 %v1181_v38, 0.0  ;;  %v1183_v44 = vadd.f32 %v1177_v33, %v1161_v42  ;;  %v2738_v33 = vld [vmem:[%s3544_s8 + $0x18] sm:$0xff]  }
 0x26f   :  { %v1198_v45 = vrot.slane %v1184_v40, 4  ;;  %v1186_v46 = vmax.f32 %v1182_v41, 0.0  ;;  %v2742_v38 = vld [vmem:[%s3544_s8 + $0x38] sm:$0xff]  }
 0x270   :  { %v1199_v47 = vrot.slane %v1185_v43, 4  ;;  %v1187_v48 = vmax.f32 %v1183_v44, 0.0 }
 0x271   :  { %v1190_v49 = vrot.slane %v1186_v46, 4  ;;  %v3345_v12 = vsel %vm60_vm1, %v1198_v45, %v1186_v46 }
 0x272   :  { %v1191_v11 = vrot.slane %v1187_v48, 4  ;;  %v1203_v14 = vsel %vm60_vm1, %v1199_v47, %v1187_v48  ;;  %v1206_v9 = vrot.slane %v3345_v12, 4  ;;  %v1586_v32 = vpack.c.bf16 %v3345_v12, %v3345_v12 }
 0x273   :  { %v1194_v50 = vsel %vm60_vm1, %v1184_v40, %v1190_v49  ;;  %v1207_v51 = vrot.slane %v1203_v14, 4  ;;  %v1587_v17 = vpack.c.bf16 %v1203_v14, %v1203_v14 }
 0x274   :  { %v1195_v52 = vsel %vm60_vm1, %v1185_v43, %v1191_v11  ;;  %v1279_v58 = vpack.c.bf16 %v1194_v50, %v1194_v50  ;;  %v2298_v15 = vpack.c.bf16 %v1206_v9, %v1206_v9 }
 0x275   :  { %v1280_v54 = vpack.c.bf16 %v1195_v52, %v1195_v52  ;;  %v2293_v60 = vpack.c.bf16 %v1207_v51, %v1207_v51  ;;  %v2348_v51 = vld [vmem:[%s3545_s7] ss:$0 sm:$0xff] }
 0x277   :  { %1409 = vmatprep.mubr.bf16.mxu0 %v1280_v54 }
 0x278   :  { %1410 = vmatmul.mubr.bf16.vlgmr.msra.gmra.mrb[8].mxu0 %v1279_v58 }
 0x279   :  { %2390 = vmatpush3.bf16.msra.mxu0 %v2704_v56  ;;  %2294 = vmatprep.mubr.msk.bf16.mxu0 %vm2292_vm5, %v2293_v60  ;;  %v1859_v60 = vld [vmem:[%s3546_s10] sm:$0xf]  ;;  %s2759_s10 = smov 4  }
 0x27a   :  { %2391 = vmatprep.subr.bf16.mxu0 %v2705_v59 }
 0x27d   :  { %2392 = vmatpush3.bf16.msra.mxu0 %v2706_v63  ;;  %v1873_v63 = vsel %vm60_vm1, %v1859_v60, 0 }
 0x27e   :  { %2393 = vmatprep.subr.bf16.mxu0 %v2707_v34 }
 0x281   :  { %2394 = vmatpush3.bf16.msra.mxu0 %v2708_v57 }
 0x282   :  { %2395 = vmatprep.subr.bf16.mxu0 %v2709_v62 }
 0x285   :  { %2396 = vmatpush3.bf16.msra.mxu0 %v2710_v0  ;;  %v2357_v0 = vld [vmem:[%s3547_s9] ss:$0 sm:$0xff] }
 0x286   :  { %2397 = vmatprep.subr.bf16.mxu0 %v2711_v1 }
 0x289   :  { %2398 = vmatpush3.bf16.msra.mxu0 %v2712_v2 }
 0x28a   :  { %2399 = vmatprep.subr.bf16.mxu0 %v2713_v3 }
 0x28d   :  { %2400 = vmatpush3.bf16.msra.mxu0 %v2714_v4 }
 0x28e   :  { %2401 = vmatprep.subr.bf16.mxu0 %v2715_v5 }
 0x291   :  { %2402 = vmatpush3.bf16.msra.mxu0 %v2716_v6 }
 0x292   :  { %2403 = vmatprep.subr.bf16.mxu0 %v2717_v7 }
 0x295   :  { %2404 = vmatpush3.bf16.msra.mxu0 %v2718_v8 }
 0x296   :  { %2411 = vmatprep.subr.bf16.mxu0 %v2719_v10  ;;  %v2743_v10 = vld [vmem:[%s3548_s12] sm:$0xff]  }
 0x298   :  { %2299 = vmatmul.mubr.msk.bf16.vlgmr.msra.gmra.mrb[12].mxu0 %vm2292_vm5, %v2298_v15  ;;  %v2745_v15 = vld [vmem:[%s3548_s12 + $0x10] sm:$0xff]  }
 0x299   :  { %2412 = vmatpush3.bf16.msra.mxu0 %v2720_v13  ;;  %1716 = vmatprep.mubr.bf16.mxu0 %v1587_v17  ;;  %v2744_v13 = vld [vmem:[%s3548_s12 + $0x8] sm:$0xff]   ;;  %v2358_v17 = vld [vmem:[%s3549_s11] ss:$0 sm:$0xff] }
 0x29a   :  { %2413 = vmatprep.subr.bf16.mxu0 %v2721_v16  ;;  %v2746_v16 = vld [vmem:[%s3548_s12 + $0x18] sm:$0xff]  }
 0x29d   :  { %2414 = vmatpush3.bf16.msra.mxu0 %v2722_v18 }
 0x29e   :  { %2415 = vmatprep.subr.bf16.mxu0 %v2723_v19 }
 0x2a1   :  { %2416 = vmatpush3.bf16.msra.mxu0 %v2724_v20 }
 0x2a2   :  { %2417 = vmatprep.subr.bf16.mxu0 %v2725_v61 }
 0x2a5   :  { %2418 = vmatpush3.bf16.msra.mxu0 %v2726_v21 }
 0x2a6   :  { %2419 = vmatprep.subr.bf16.mxu0 %v2727_v22 }
 0x2a9   :  { %2420 = vmatpush3.bf16.msra.mxu0 %v2728_v23 }
 0x2aa   :  { %2421 = vmatprep.subr.bf16.mxu0 %v2729_v24  ;;  %v2360_v24 = vld [vmem:[%s3550_s13] ss:$0 sm:$0xff] }
 0x2ad   :  { %2422 = vmatpush3.bf16.msra.mxu0 %v2730_v25 }
 0x2ae   :  { %2423 = vmatprep.subr.bf16.mxu0 %v2731_v26 }
 0x2b1   :  { %2424 = vmatpush3.bf16.msra.mxu0 %v2732_v27 }
 0x2b2   :  { %2425 = vmatprep.subr.bf16.mxu0 %v2733_v28 }
 0x2b5   :  { %2426 = vmatpush3.bf16.msra.mxu0 %v2734_v29 }
 0x2b6   :  { %2449 = vmatprep.subr.bf16.mxu0 %v2757_v53 }
 0x2b8   :  { %1717 = vmatmul.mubr.bf16.vlgmr.msra.gmra.mrb[16].mxu0 %v1586_v32 }
 0x2b9   :  { %2450 = vmatpush3.bf16.msra.mxu0 %v2735_v55  ;;  %2465 = vmatprep.mubr.msk.bf16.mxu0 %vm2758_vm6, %v2757_v53 }
 0x2ba   :  { %2451 = vmatprep.subr.bf16.mxu0 %v2757_v53 }
 0x2bd   :  { %2452 = vmatpush3.bf16.msra.mxu0 %v2736_v30 }
 0x2be   :  { %2453 = vmatprep.subr.bf16.mxu0 %v2757_v53 }
 0x2c1   :  { %2454 = vmatpush3.bf16.msra.mxu0 %v2737_v31 }
 0x2c2   :  { %2455 = vmatprep.subr.bf16.mxu0 %v2757_v53 }
 0x2c5   :  { %2456 = vmatpush3.bf16.msra.mxu0 %v2738_v33 }
 0x2c6   :  { %2457 = vmatprep.subr.bf16.mxu0 %v2757_v53 }
 0x2c9   :  { %2458 = vmatpush3.bf16.msra.mxu0 %v2739_v35 }
 0x2ca   :  { %2459 = vmatprep.subr.bf16.mxu0 %v2757_v53 }
 0x2cd   :  { %2460 = vmatpush3.bf16.msra.mxu0 %v2740_v36 }
 0x2ce   :  { %2461 = vmatprep.subr.bf16.mxu0 %v2757_v53 }
 0x2d1   :  { %2462 = vmatpush3.bf16.msra.mxu0 %v2741_v37 }
 0x2d2   :  { %2463 = vmatprep.subr.bf16.mxu0 %v2757_v53 }
 0x2d5   :  { %2464 = vmatpush3.bf16.msra.mxu0 %v2742_v38 }
 0x2d6   :  { %2469 = vmatprep.subr.bf16.mxu0 %v2757_v53 }
 0x34b   :  { %v2383_v39 = vpop.f32.mrb[8].mxu0 }
 0x34c   :  { %v2384_v40 = vpop.f32.mrb[9].mxu0 }
 0x34d   :  { %v2385_v41 = vadd.f32 %v2384_v40, %v2383_v39  ;;  %v2386_v42 = vpop.f32.mrb[10].mxu0 }
 0x34e   :  { %v2387_v43 = vpop.f32.mrb[11].mxu0 }
 0x36b   :  { %v2405_v44 = vpop.f32.mrb[12].mxu0 }
 0x36c   :  { %v2406_v45 = vpop.f32.mrb[13].mxu0 }
 0x36d   :  { %v2407_v46 = vadd.f32 %v2406_v45, %v2405_v44  ;;  %v2408_v47 = vpop.f32.mrb[14].mxu0 }
 0x36e   :  { %v2409_v48 = vpop.f32.mrb[15].mxu0 }
 0x36f   :  { %v1548_v49 = vadd.f32 %v2407_v46, %v2385_v41 }
 0x38b   :  { %v2427_v12 = vpop.f32.mrb[16].mxu0 }
 0x38c   :  { %v2428_v11 = vpop.f32.mrb[17].mxu0 }
 0x38d   :  { %v2429_v14 = vadd.f32 %v2428_v11, %v2427_v12  ;;  %v2430_v50 = vpop.f32.mrb[18].mxu0 }
 0x38e   :  { %v2431_v52 = vpop.f32.mrb[19].mxu0 }
 0x38f   :  { %v1724_v54 = vadd.f32 %v2429_v14, %v1548_v49 }
 0x391   :  { %v1732_v56 = vadd.f32 %v2348_v51, %v1724_v54 }
 0x393   :  { %v1733_v58 = vmax.f32 %v1732_v56, 0.0 }
 0x395   :  { %v1750_v59 = vpack.c.bf16 %v1733_v58, %v1733_v58 }
 0x397   :  { %2466 = vmatmul.mubr.bf16.vlgmr.msra.gmra.mrb[20].mxu0 %v1750_v59 }
 0x398   :  { %2471 = vmatprep.mubr.msk.bf16.mxu0 %vm2758_vm6, %v2757_v53  ;;  %2470 = vmatpush3.bf16.msra.mxu0 %v1873_v63 }
 0x399   :  { %2475 = vmatprep.subr.bf16.mxu0 %v2757_v53 }
 0x46a   :  { %v1833_v34 = vpop.f32.mrb[20].mxu0 }
 0x46b   :  { %v1840_v57 = vrot.slane %v1833_v34, 4  ;;  %v2467_v62 = vpop.f32.mrb[21].mxu0 }
 0x46c   :  { %v1836_v1 = vpop.f32.mrb[22].mxu0 }
 0x46d   :  { %v1842_v2 = vadd.f32 %v1840_v57, %v1833_v34  ;;  %v2468_v3 = vpop.f32.mrb[23].mxu0 }
 0x46f   :  { %v1850_v4 = vadd.f32 %v2357_v0, %v1842_v2 }
 0x471   :  { %2747 = vtanh.f32 %v1850_v4 }
 0x47b   :  { %v2748_v5 = vpop.eup %2747 }
 0x47c   :  { %v1853_v6 = vrot.slane %v2748_v5, 2 }
 0x47e   :  { %1854 = vrot.lane.b32.xlu0 %v1853_v6, %s2759_s10 }
 0x4f0   :  { %v1855_v7 = vpop.permute.xlu0 %1854 }
 0x4f1   :  { %v1858_v8 = vsel %vm1857_vm7, %v2748_v5, %v1855_v7 }
 0x4f2   :  { %v1860_v9 = vpack.c.bf16 %v1858_v8, %v1858_v8 }
 0x4f4   :  { %2472 = vmatmul.mubr.msk.bf16.vlgmr.msra.gmra.mrb[24].mxu0 %vm1868_vm8, %v1860_v9 }
 0x4f5   :  { %2483 = vmatprep.mubr.msk.bf16.mxu0 %vm2758_vm6, %v2757_v53  ;;  %2476 = vmatpush3.bf16.msra.mxu0 %v2743_v10 }
 0x4f6   :  { %2477 = vmatprep.subr.bf16.mxu0 %v2757_v53 }
 0x4f9   :  { %2478 = vmatpush3.bf16.msra.mxu0 %v2744_v13 }
 0x4fa   :  { %2479 = vmatprep.subr.bf16.mxu0 %v2757_v53 }
 0x4fd   :  { %2480 = vmatpush3.bf16.msra.mxu0 %v2745_v15 }
 0x4fe   :  { %2481 = vmatprep.subr.bf16.mxu0 %v2757_v53 }
 0x501   :  { %2482 = vmatpush3.bf16.msra.mxu0 %v2746_v16 }
 0x5c7   :  { %v1909_v18 = vpop.f32.mrb[24].mxu0 }
 0x5c8   :  { %v1910_v19 = vadd.f32 %v2358_v17, %v1909_v18  ;;  %v2473_v20 = vpop.f32.mrb[25].mxu0 }
 0x5c9   :  { %v1912_v61 = vpop.f32.mrb[26].mxu0 }
 0x5ca   :  { %2749 = vtanh.f32 %v1910_v19  ;;  %v2474_v21 = vpop.f32.mrb[27].mxu0 }
 0x5d4   :  { %v2750_v22 = vpop.eup %2749 }
 0x5d5   :  { %v1924_v23 = vpack.c.bf16 %v2750_v22, %v2750_v22 }
 0x5d7   :  { %2484 = vmatmul.mubr.msk.bf16.vlgmr.msra.gmra.mrb[28].mxu0 %vm1956_vm9, %v1924_v23 }
 0x6aa   :  { %v1994_v25 = vpop.f32.mrb[28].mxu0 }
 0x6ab   :  { %v1995_v26 = vadd.f32 %v2360_v24, %v1994_v25  ;;  %v2485_v27 = vpop.f32.mrb[29].mxu0 }
 0x6ac   :  { %v1997_v28 = vpop.f32.mrb[30].mxu0 }
 0x6ad   :  { %v2366_v29 = vmul.f32 -1.442695, %v1995_v26  ;;  %v2486_v32 = vpop.f32.mrb[31].mxu0 }
 0x6af   :  { %2751 = vpow2.f32 %v2366_v29 }
 0x6b9   :  { %v2752_v53 = vpop.eup %2751 }
 0x6ba   :  { %v2003_v55 = vadd.f32 1.0, %v2752_v53 }
 0x6bc   :  { %2753 = vrcp.f32 %v2003_v55 }
 0x6c6   :  { %v2754_v30 = vpop.eup %2753 }
 0x6c7   :  { %v2007_v31 = vsel %vm2006_vm10, %v1995_v26, %v2754_v30 }
 0x6c8   :  { %v2009_v33 = vsel %vm2008_vm11, %v2007_v31, 0.0 }
 0x6c9   :  { %2011 = vrot.lane.b32.xlu0 %v2009_v33, %s2759_s10 }
 0x73b   :  { %v2012_v35 = vpop.permute.xlu0 %2011 }
 0x73c   :  { %v2014_v36 = vsel %vm1857_vm7, %v2748_v5, %v2012_v35 }
 0x73d   :  { %v2016_v37 = vsel %vm2015_vm12, %v2014_v36, 0.0 }
 0x73e   :  { %2017 = vst [vmem:[%s3551_s14] sm:$0xf] %v2016_v37 }

</bundles_post_ra>
